<compile_context>
chip_gen: v5e
topology: v5e:2x2
jax: 0.10.0
libtpu: 0.0.40
codegen_flags: <defaults>
</compile_context>

<pallas_src>
import functools

import jax
import jax.numpy as jnp
from jax import lax
from jax.experimental import pallas as pl
from jax.experimental.pallas import tpu as pltpu

EPS = 1e-5


# ---------------------------------------------------------------------------
# Kernels
# ---------------------------------------------------------------------------
def _mm_stats_kernel(x_ref, w_ref, h_ref, stats_ref, *, compute_dtype):
    """h = x @ W^T (torch layout, no bias); accumulate per-feature sum/sum-sq."""
    @pl.when(pl.program_id(0) == 0)
    def _():
        stats_ref[...] = jnp.zeros_like(stats_ref)

    x = x_ref[...].astype(compute_dtype)
    # Contract dim 1 of x with dim 1 of the (out, in) torch-layout weight:
    # no wrapper-side transpose, MXU handles either orientation.
    h = lax.dot_general(x, w_ref[...],
                        dimension_numbers=(((1,), (1,)), ((), ())),
                        preferred_element_type=jnp.float32)
    h_ref[...] = h.astype(h_ref.dtype)

    s = jnp.sum(h, axis=0, keepdims=True)
    ss = jnp.sum(h * h, axis=0, keepdims=True)
    stats_ref[...] += jnp.concatenate([s, ss], axis=0)


def _bn_relu_mm_stats_kernel(h_ref, stats1_ref, g_ref, b_ref, w_ref,
                             z_ref, stats2_ref, *, n_rows, compute_dtype):
    """a = ReLU(BN1(h)); z = a @ W2^T; accumulate stats of z."""
    @pl.when(pl.program_id(0) == 0)
    def _():
        stats2_ref[...] = jnp.zeros_like(stats2_ref)

    inv_n = 1.0 / n_rows
    mu = stats1_ref[0:1, :] * inv_n
    var = stats1_ref[1:2, :] * inv_n - mu * mu
    scale = g_ref[...] * lax.rsqrt(var + EPS)        # gamma / sqrt(var + eps)
    shift = b_ref[...] - mu * scale                   # beta  - mu * scale

    a = jnp.maximum(h_ref[...].astype(jnp.float32) * scale + shift, 0.0)

    z = lax.dot_general(a.astype(compute_dtype), w_ref[...],
                        dimension_numbers=(((1,), (1,)), ((), ())),
                        preferred_element_type=jnp.float32)
    z_ref[...] = z.astype(z_ref.dtype)

    s = jnp.sum(z, axis=0, keepdims=True)
    ss = jnp.sum(z * z, axis=0, keepdims=True)
    stats2_ref[...] += jnp.concatenate([s, ss], axis=0)


def _bn_relu_residual_kernel(x_ref, z_ref, stats_ref, g_ref, b_ref, o_ref, *,
                             n_rows):
    """out = x + ReLU(BN2(z)).  No cross-tile reduction -> 'parallel' axis."""
    inv_n = 1.0 / n_rows
    mu = stats_ref[0:1, :] * inv_n
    var = stats_ref[1:2, :] * inv_n - mu * mu
    scale = g_ref[...] * lax.rsqrt(var + EPS)
    shift = b_ref[...] - mu * scale

    y = jnp.maximum(z_ref[...].astype(jnp.float32) * scale + shift, 0.0)
    o_ref[...] = (x_ref[...].astype(jnp.float32) + y).astype(o_ref.dtype)


# ---------------------------------------------------------------------------
# Wrapper
# ---------------------------------------------------------------------------
def _pick_block_n(n, target):
    """Largest multiple of 8 that divides n and is <= target; else n."""
    bn = min(target, n)
    bn -= bn % 8
    while bn >= 8:
        if n % bn == 0:
            return bn
        bn -= 8
    return n  # whole batch in one grid step (always legal)


def linear_block(x, w1, b1, g1, bb1, w2, b2, g2, bb2, *,
                 block_n=256, compute_dtype=jnp.float32):
    """x: (N, F).  w1/w2: torch layout (F_out, F_in).  b1/b2 accepted for API
    parity with nn.Linear but unused: training-mode BN exactly cancels a
    per-feature constant bias, so the two (N,F) broadcast-adds are skipped."""
    del b1, b2
    N, F = x.shape
    tn = _pick_block_n(N, block_n)
    n_tiles = N // tn
    n_rows = float(N)

    row = lambda v: v.reshape(1, F).astype(jnp.float32)
    w1c = w1.astype(compute_dtype)
    w2c = w2.astype(compute_dtype)

    tile_spec = pl.BlockSpec((tn, F), lambda i: (i, 0))   # batch-tiled
    w_spec = pl.BlockSpec((F, F), lambda i: (0, 0))       # resident weight
    row_spec = pl.BlockSpec((1, F), lambda i: (0, 0))     # resident BN params
    stat_spec = pl.BlockSpec((2, F), lambda i: (0, 0))    # resident accumulator

    # ---- pass 1: h = x @ W1^T, full-batch sum / sum-sq of h -----------------
    h, stats1 = pl.pallas_call(
        functools.partial(_mm_stats_kernel, compute_dtype=compute_dtype),
        grid=(n_tiles,),
        in_specs=[tile_spec, w_spec],
        out_specs=(tile_spec, stat_spec),
        out_shape=(jax.ShapeDtypeStruct((N, F), compute_dtype),
                   jax.ShapeDtypeStruct((2, F), jnp.float32)),
        compiler_params=pltpu.CompilerParams(
            dimension_semantics=("arbitrary",)),
    )(x, w1c)

    # ---- pass 2: a = ReLU(BN1(h)); z = a @ W2^T, stats of z -----------------
    z, stats2 = pl.pallas_call(
        functools.partial(_bn_relu_mm_stats_kernel,
                          n_rows=n_rows, compute_dtype=compute_dtype),
        grid=(n_tiles,),
        in_specs=[tile_spec, stat_spec, row_spec, row_spec, w_spec],
        out_specs=(tile_spec, stat_spec),
        out_shape=(jax.ShapeDtypeStruct((N, F), compute_dtype),
                   jax.ShapeDtypeStruct((2, F), jnp.float32)),
        compiler_params=pltpu.CompilerParams(
            dimension_semantics=("arbitrary",)),
    )(h, stats1, row(g1), row(bb1), w2c)

    # ---- pass 3: out = x + ReLU(BN2(z)) -------------------------------------
    out = pl.pallas_call(
        functools.partial(_bn_relu_residual_kernel, n_rows=n_rows),
        grid=(n_tiles,),
        in_specs=[tile_spec, tile_spec, stat_spec, row_spec, row_spec],
        out_specs=tile_spec,
        out_shape=jax.ShapeDtypeStruct((N, F), x.dtype),
        compiler_params=pltpu.CompilerParams(
            dimension_semantics=("parallel",)),   # megacore shard on v7x
    )(x, z, stats2, row(g2), row(bb2))
    return out


# ---------------------------------------------------------------------------
# Pure-JAX reference (full torch semantics incl. biases)
# ---------------------------------------------------------------------------
def linear_block_ref(x, w1, b1, g1, bb1, w2, b2, g2, bb2):
    def bn(y, g, b):
        mu = jnp.mean(y, axis=0, keepdims=True)
        var = jnp.mean((y - mu) ** 2, axis=0, keepdims=True)
        return (y - mu) * lax.rsqrt(var + EPS) * g + b

    y = x @ w1.T + b1
    y = jnp.maximum(bn(y, g1, bb1), 0.0)
    y = y @ w2.T + b2
    y = jnp.maximum(bn(y, g2, bb2), 0.0)
    return x + y


if __name__ == "__main__":
    N, F = 512, 128  # batch, linear_size -> multiple batch tiles exercise pipelining

    key = jax.random.PRNGKey(0)
    kx, kw1, kb1, kw2, kb2, kg1, kbb1, kg2, kbb2 = jax.random.split(key, 9)

    x = jax.random.normal(kx, (N, F), dtype=jnp.float32)

    # nn.Linear(F, F): weight (F, F), bias (F,) — deterministic synthetic init.
    scale = 1.0 / jnp.sqrt(F)
    w1 = jax.random.uniform(kw1, (F, F), jnp.float32, -scale, scale)
    b1 = jax.random.uniform(kb1, (F,), jnp.float32, -scale, scale)
    w2 = jax.random.uniform(kw2, (F, F), jnp.float32, -scale, scale)
    b2 = jax.random.uniform(kb2, (F,), jnp.float32, -scale, scale)

    # BatchNorm1d affine params (torch default gamma=1, beta=0; perturbed so
    # the test is non-trivial).
    g1 = 1.0 + 0.1 * jax.random.normal(kg1, (F,), jnp.float32)
    bb1 = 0.1 * jax.random.normal(kbb1, (F,), jnp.float32)
    g2 = 1.0 + 0.1 * jax.random.normal(kg2, (F,), jnp.float32)
    bb2 = 0.1 * jax.random.normal(kbb2, (F,), jnp.float32)

    ref = linear_block_ref(x, w1, b1, g1, bb1, w2, b2, g2, bb2)

    # f32 path (v5e-style: f32 MXU + f32 elementwise), 128-row batch tiles.
    run_f32 = jax.jit(functools.partial(
        linear_block, block_n=128, compute_dtype=jnp.float32))
    out = jax.block_until_ready(run_f32(x, w1, b1, g1, bb1, w2, b2, g2, bb2))
    assert out.shape == (N, F) and out.dtype == jnp.float32
    assert jnp.allclose(out, ref, atol=1e-3, rtol=1e-3), "f32 mismatch vs reference"

    # bf16 MXU path (v6e/v7x recommendation): f32 accumulation + f32 BN math,
    # bf16 weights/activations into the MXU, 256-row batch tiles.
    run_bf16 = jax.jit(functools.partial(
        linear_block, block_n=256, compute_dtype=jnp.bfloat16))
    out_bf16 = jax.block_until_ready(run_bf16(x, w1, b1, g1, bb1, w2, b2, g2, bb2))
    assert out_bf16.shape == (N, F) and out_bf16.dtype == jnp.float32
    assert jnp.allclose(out_bf16, ref, atol=1e-1, rtol=1e-1), "bf16 mismatch vs reference"

    print("KERNEL_OK")
</pallas_src>

<mosaic_0001>
module attributes {stable_mosaic.version = 11 : i64} {
  func.func @_bn_relu_mm_stats_kernel(%arg0: i32, %arg1: memref<128x128xf32, #tpu.memory_space<vmem>>, %arg2: memref<2x128xf32, #tpu.memory_space<vmem>>, %arg3: memref<1x128xf32, #tpu.memory_space<vmem>>, %arg4: memref<1x128xf32, #tpu.memory_space<vmem>>, %arg5: memref<128x128xf32, #tpu.memory_space<vmem>>, %arg6: memref<128x128xf32, #tpu.memory_space<vmem>>, %arg7: memref<2x128xf32, #tpu.memory_space<vmem>>) attributes {dimension_semantics = [#tpu.dimension_semantics<arbitrary>], iteration_bounds = array<i64: 4>, scalar_prefetch = 0 : i64, scratch_operands = 0 : i64, tpu.core_type = #tpu.core_type<tc>, window_params = [{transform_indices = @transform_0, window_bounds = array<i64: 128, 128>}, {pipeline_mode = #tpu.pipeline_mode<synchronous>, transform_indices = @transform_1, window_bounds = array<i64: 2, 128>}, {pipeline_mode = #tpu.pipeline_mode<synchronous>, transform_indices = @transform_2, window_bounds = array<i64: 1, 128>}, {pipeline_mode = #tpu.pipeline_mode<synchronous>, transform_indices = @transform_3, window_bounds = array<i64: 1, 128>}, {pipeline_mode = #tpu.pipeline_mode<synchronous>, transform_indices = @transform_4, window_bounds = array<i64: 128, 128>}, {transform_indices = @transform_5, window_bounds = array<i64: 128, 128>}, {pipeline_mode = #tpu.pipeline_mode<synchronous>, transform_indices = @transform_6, window_bounds = array<i64: 2, 128>}]} {
    %c0_i32 = arith.constant 0 : i32
    %0 = arith.cmpi eq, %arg0, %c0_i32 : i32
    %1 = arith.extui %0 : i1 to i32
    %c0_i32_0 = arith.constant 0 : i32
    %2 = arith.cmpi ne, %1, %c0_i32_0 : i32
    scf.if %2 {
      %cst_23 = arith.constant 0.000000e+00 : f32
      %38 = vector.broadcast %cst_23 : f32 to vector<2x128xf32>
      %c0_24 = arith.constant 0 : index
      %c0_25 = arith.constant 0 : index
      %39 = vector.load %arg7[%c0_24, %c0_25] : memref<2x128xf32, #tpu.memory_space<vmem>>, vector<2x128xf32>
      tpu.vector_store %arg7[%c0_24, %c0_25], %38 {strides = array<i32>} : memref<2x128xf32, #tpu.memory_space<vmem>>, vector<2x128xf32>,
    } else {
    }
    %c0 = arith.constant 0 : index
    %c0_1 = arith.constant 0 : index
    %3 = vector.load %arg2[%c0, %c0_1] : memref<2x128xf32, #tpu.memory_space<vmem>>, vector<1x128xf32>
    %cst = arith.constant 0.001953125 : f32
    %4 = vector.broadcast %cst : f32 to vector<1x128xf32>
    %5 = arith.mulf %3, %4 : vector<1x128xf32>
    %c1 = arith.constant 1 : index
    %c0_2 = arith.constant 0 : index
    %6 = vector.load %arg2[%c1, %c0_2] : memref<2x128xf32, #tpu.memory_space<vmem>>, vector<1x128xf32>
    %cst_3 = arith.constant 0.001953125 : f32
    %7 = vector.broadcast %cst_3 : f32 to vector<1x128xf32>
    %8 = arith.mulf %6, %7 : vector<1x128xf32>
    %9 = arith.mulf %5, %5 : vector<1x128xf32>
    %10 = arith.subf %8, %9 : vector<1x128xf32>
    %c0_4 = arith.constant 0 : index
    %c0_5 = arith.constant 0 : index
    %11 = vector.load %arg3[%c0_4, %c0_5] : memref<1x128xf32, #tpu.memory_space<vmem>>, vector<1x128xf32>
    %cst_6 = arith.constant 9.99999974E-6 : f32
    %12 = vector.broadcast %cst_6 : f32 to vector<1x128xf32>
    %13 = arith.addf %10, %12 : vector<1x128xf32>
    %14 = math.rsqrt %13 : vector<1x128xf32>
    %15 = arith.mulf %11, %14 : vector<1x128xf32>
    %c0_7 = arith.constant 0 : index
    %c0_8 = arith.constant 0 : index
    %16 = vector.load %arg4[%c0_7, %c0_8] : memref<1x128xf32, #tpu.memory_space<vmem>>, vector<1x128xf32>
    %17 = arith.mulf %5, %15 : vector<1x128xf32>
    %18 = arith.subf %16, %17 : vector<1x128xf32>
    %c0_9 = arith.constant 0 : index
    %c0_10 = arith.constant 0 : index
    %19 = vector.load %arg1[%c0_9, %c0_10] : memref<128x128xf32, #tpu.memory_space<vmem>>, vector<128x128xf32>
    %20 = vector.broadcast %15 : vector<1x128xf32> to vector<128x128xf32>
    %21 = arith.mulf %19, %20 : vector<128x128xf32>
    %22 = vector.broadcast %18 : vector<1x128xf32> to vector<128x128xf32>
    %23 = arith.addf %21, %22 : vector<128x128xf32>
    %cst_11 = arith.constant 0.000000e+00 : f32
    %24 = vector.broadcast %cst_11 : f32 to vector<128x128xf32>
    %25 = arith.maximumf %23, %24 : vector<128x128xf32>
    %c0_12 = arith.constant 0 : index
    %c0_13 = arith.constant 0 : index
    %26 = vector.load %arg5[%c0_12, %c0_13] : memref<128x128xf32, #tpu.memory_space<vmem>>, vector<128x128xf32>
    %cst_14 = arith.constant dense<0.000000e+00> : vector<128x128xf32>
    %27 = tpu.matmul %25, %26, %cst_14 {dimension_numbers = #tpu.dot_dimension_numbers<[1], [1], [0], [0], [0, 0, 1, 0], [], []>} : vector<128x128xf32>, vector<128x128xf32>, vector<128x128xf32> -> vector<128x128xf32>
    %c0_15 = arith.constant 0 : index
    %c0_16 = arith.constant 0 : index
    %28 = vector.load %arg6[%c0_15, %c0_16] : memref<128x128xf32, #tpu.memory_space<vmem>>, vector<128x128xf32>
    tpu.vector_store %arg6[%c0_15, %c0_16], %27 {strides = array<i32>} : memref<128x128xf32, #tpu.memory_space<vmem>>, vector<128x128xf32>,
    %cst_17 = arith.constant dense<0.000000e+00> : vector<128xf32>
    %29 = vector.multi_reduction <add>, %27, %cst_17 [0] : vector<128x128xf32> to vector<128xf32>
    %30 = vector.shape_cast %29 : vector<128xf32> to vector<1x128xf32>
    %31 = arith.mulf %27, %27 : vector<128x128xf32>
    %cst_18 = arith.constant dense<0.000000e+00> : vector<128xf32>
    %32 = vector.multi_reduction <add>, %31, %cst_18 [0] : vector<128x128xf32> to vector<128xf32>
    %33 = vector.shape_cast %32 : vector<128xf32> to vector<1x128xf32>
    %c0_19 = arith.constant 0 : index
    %c0_20 = arith.constant 0 : index
    %34 = vector.load %arg7[%c0_19, %c0_20] : memref<2x128xf32, #tpu.memory_space<vmem>>, vector<2x128xf32>
    %35 = tpu.concatenate %30, %33 in 0 : vector<1x128xf32>, vector<1x128xf32> -> vector<2x128xf32>
    %36 = arith.addf %34, %35 : vector<2x128xf32>
    %c0_21 = arith.constant 0 : index
    %c0_22 = arith.constant 0 : index
    %37 = vector.load %arg7[%c0_21, %c0_22] : memref<2x128xf32, #tpu.memory_space<vmem>>, vector<2x128xf32>
    tpu.vector_store %arg7[%c0_21, %c0_22], %36 {strides = array<i32>} : memref<2x128xf32, #tpu.memory_space<vmem>>, vector<2x128xf32>,
    return
  }
  func.func @transform_0(%arg0: i32) -> (i32, i32) {
    %c0_i32 = arith.constant 0 : i32
    %c0_i32_0 = arith.constant 0 : i32
    return %arg0, %c0_i32 : i32, i32
  }
  func.func @transform_1(%arg0: i32) -> (i32, i32) {
    %c0_i32 = arith.constant 0 : i32
    %c0_i32_0 = arith.constant 0 : i32
    %c0_i32_1 = arith.constant 0 : i32
    return %c0_i32, %c0_i32_0 : i32, i32
  }
  func.func @transform_2(%arg0: i32) -> (i32, i32) {
    %c0_i32 = arith.constant 0 : i32
    %c0_i32_0 = arith.constant 0 : i32
    %c0_i32_1 = arith.constant 0 : i32
    return %c0_i32, %c0_i32_0 : i32, i32
  }
  func.func @transform_3(%arg0: i32) -> (i32, i32) {
    %c0_i32 = arith.constant 0 : i32
    %c0_i32_0 = arith.constant 0 : i32
    %c0_i32_1 = arith.constant 0 : i32
    return %c0_i32, %c0_i32_0 : i32, i32
  }
  func.func @transform_4(%arg0: i32) -> (i32, i32) {
    %c0_i32 = arith.constant 0 : i32
    %c0_i32_0 = arith.constant 0 : i32
    %c0_i32_1 = arith.constant 0 : i32
    return %c0_i32, %c0_i32_0 : i32, i32
  }
  func.func @transform_5(%arg0: i32) -> (i32, i32) {
    %c0_i32 = arith.constant 0 : i32
    %c0_i32_0 = arith.constant 0 : i32
    return %arg0, %c0_i32 : i32, i32
  }
  func.func @transform_6(%arg0: i32) -> (i32, i32) {
    %c0_i32 = arith.constant 0 : i32
    %c0_i32_0 = arith.constant 0 : i32
    %c0_i32_1 = arith.constant 0 : i32
    return %c0_i32, %c0_i32_0 : i32, i32
  }
}

module attributes {stable_mosaic.version = 11 : i64} {
  func.func @_mm_stats_kernel(%arg0: i32, %arg1: memref<128x128xf32, #tpu.memory_space<vmem>>, %arg2: memref<128x128xf32, #tpu.memory_space<vmem>>, %arg3: memref<128x128xf32, #tpu.memory_space<vmem>>, %arg4: memref<2x128xf32, #tpu.memory_space<vmem>>) attributes {dimension_semantics = [#tpu.dimension_semantics<arbitrary>], iteration_bounds = array<i64: 4>, scalar_prefetch = 0 : i64, scratch_operands = 0 : i64, tpu.core_type = #tpu.core_type<tc>, window_params = [{transform_indices = @transform_0, window_bounds = array<i64: 128, 128>}, {pipeline_mode = #tpu.pipeline_mode<synchronous>, transform_indices = @transform_1, window_bounds = array<i64: 128, 128>}, {transform_indices = @transform_2, window_bounds = array<i64: 128, 128>}, {pipeline_mode = #tpu.pipeline_mode<synchronous>, transform_indices = @transform_3, window_bounds = array<i64: 2, 128>}]} {
    %c0_i32 = arith.constant 0 : i32
    %0 = arith.cmpi eq, %arg0, %c0_i32 : i32
    %1 = arith.extui %0 : i1 to i32
    %c0_i32_0 = arith.constant 0 : i32
    %2 = arith.cmpi ne, %1, %c0_i32_0 : i32
    scf.if %2 {
      %cst_12 = arith.constant 0.000000e+00 : f32
      %16 = vector.broadcast %cst_12 : f32 to vector<2x128xf32>
      %c0_13 = arith.constant 0 : index
      %c0_14 = arith.constant 0 : index
      %17 = vector.load %arg4[%c0_13, %c0_14] : memref<2x128xf32, #tpu.memory_space<vmem>>, vector<2x128xf32>
      tpu.vector_store %arg4[%c0_13, %c0_14], %16 {strides = array<i32>} : memref<2x128xf32, #tpu.memory_space<vmem>>, vector<2x128xf32>,
    } else {
    }
    %c0 = arith.constant 0 : index
    %c0_1 = arith.constant 0 : index
    %3 = vector.load %arg1[%c0, %c0_1] : memref<128x128xf32, #tpu.memory_space<vmem>>, vector<128x128xf32>
    %c0_2 = arith.constant 0 : index
    %c0_3 = arith.constant 0 : index
    %4 = vector.load %arg2[%c0_2, %c0_3] : memref<128x128xf32, #tpu.memory_space<vmem>>, vector<128x128xf32>
    %cst = arith.constant dense<0.000000e+00> : vector<128x128xf32>
    %5 = tpu.matmul %3, %4, %cst {dimension_numbers = #tpu.dot_dimension_numbers<[1], [1], [0], [0], [0, 0, 1, 0], [], []>} : vector<128x128xf32>, vector<128x128xf32>, vector<128x128xf32> -> vector<128x128xf32>
    %c0_4 = arith.constant 0 : index
    %c0_5 = arith.constant 0 : index
    %6 = vector.load %arg3[%c0_4, %c0_5] : memref<128x128xf32, #tpu.memory_space<vmem>>, vector<128x128xf32>
    tpu.vector_store %arg3[%c0_4, %c0_5], %5 {strides = array<i32>} : memref<128x128xf32, #tpu.memory_space<vmem>>, vector<128x128xf32>,
    %cst_6 = arith.constant dense<0.000000e+00> : vector<128xf32>
    %7 = vector.multi_reduction <add>, %5, %cst_6 [0] : vector<128x128xf32> to vector<128xf32>
    %8 = vector.shape_cast %7 : vector<128xf32> to vector<1x128xf32>
    %9 = arith.mulf %5, %5 : vector<128x128xf32>
    %cst_7 = arith.constant dense<0.000000e+00> : vector<128xf32>
    %10 = vector.multi_reduction <add>, %9, %cst_7 [0] : vector<128x128xf32> to vector<128xf32>
    %11 = vector.shape_cast %10 : vector<128xf32> to vector<1x128xf32>
    %c0_8 = arith.constant 0 : index
    %c0_9 = arith.constant 0 : index
    %12 = vector.load %arg4[%c0_8, %c0_9] : memref<2x128xf32, #tpu.memory_space<vmem>>, vector<2x128xf32>
    %13 = tpu.concatenate %8, %11 in 0 : vector<1x128xf32>, vector<1x128xf32> -> vector<2x128xf32>
    %14 = arith.addf %12, %13 : vector<2x128xf32>
    %c0_10 = arith.constant 0 : index
    %c0_11 = arith.constant 0 : index
    %15 = vector.load %arg4[%c0_10, %c0_11] : memref<2x128xf32, #tpu.memory_space<vmem>>, vector<2x128xf32>
    tpu.vector_store %arg4[%c0_10, %c0_11], %14 {strides = array<i32>} : memref<2x128xf32, #tpu.memory_space<vmem>>, vector<2x128xf32>,
    return
  }
  func.func @transform_0(%arg0: i32) -> (i32, i32) {
    %c0_i32 = arith.constant 0 : i32
    %c0_i32_0 = arith.constant 0 : i32
    return %arg0, %c0_i32 : i32, i32
  }
  func.func @transform_1(%arg0: i32) -> (i32, i32) {
    %c0_i32 = arith.constant 0 : i32
    %c0_i32_0 = arith.constant 0 : i32
    %c0_i32_1 = arith.constant 0 : i32
    return %c0_i32, %c0_i32_0 : i32, i32
  }
  func.func @transform_2(%arg0: i32) -> (i32, i32) {
    %c0_i32 = arith.constant 0 : i32
    %c0_i32_0 = arith.constant 0 : i32
    return %arg0, %c0_i32 : i32, i32
  }
  func.func @transform_3(%arg0: i32) -> (i32, i32) {
    %c0_i32 = arith.constant 0 : i32
    %c0_i32_0 = arith.constant 0 : i32
    %c0_i32_1 = arith.constant 0 : i32
    return %c0_i32, %c0_i32_0 : i32, i32
  }
}

module attributes {stable_mosaic.version = 11 : i64} {
  func.func @_bn_relu_residual_kernel(%arg0: i32, %arg1: memref<128x128xf32, #tpu.memory_space<vmem>>, %arg2: memref<128x128xf32, #tpu.memory_space<vmem>>, %arg3: memref<2x128xf32, #tpu.memory_space<vmem>>, %arg4: memref<1x128xf32, #tpu.memory_space<vmem>>, %arg5: memref<1x128xf32, #tpu.memory_space<vmem>>, %arg6: memref<128x128xf32, #tpu.memory_space<vmem>>) attributes {dimension_semantics = [#tpu.dimension_semantics<parallel>], iteration_bounds = array<i64: 4>, scalar_prefetch = 0 : i64, scratch_operands = 0 : i64, tpu.core_type = #tpu.core_type<tc>, window_params = [{transform_indices = @transform_0, window_bounds = array<i64: 128, 128>}, {transform_indices = @transform_1, window_bounds = array<i64: 128, 128>}, {pipeline_mode = #tpu.pipeline_mode<synchronous>, transform_indices = @transform_2, window_bounds = array<i64: 2, 128>}, {pipeline_mode = #tpu.pipeline_mode<synchronous>, transform_indices = @transform_3, window_bounds = array<i64: 1, 128>}, {pipeline_mode = #tpu.pipeline_mode<synchronous>, transform_indices = @transform_4, window_bounds = array<i64: 1, 128>}, {transform_indices = @transform_5, window_bounds = array<i64: 128, 128>}]} {
    %c0 = arith.constant 0 : index
    %c0_0 = arith.constant 0 : index
    %0 = vector.load %arg3[%c0, %c0_0] : memref<2x128xf32, #tpu.memory_space<vmem>>, vector<1x128xf32>
    %cst = arith.constant 0.001953125 : f32
    %1 = vector.broadcast %cst : f32 to vector<1x128xf32>
    %2 = arith.mulf %0, %1 : vector<1x128xf32>
    %c1 = arith.constant 1 : index
    %c0_1 = arith.constant 0 : index
    %3 = vector.load %arg3[%c1, %c0_1] : memref<2x128xf32, #tpu.memory_space<vmem>>, vector<1x128xf32>
    %cst_2 = arith.constant 0.001953125 : f32
    %4 = vector.broadcast %cst_2 : f32 to vector<1x128xf32>
    %5 = arith.mulf %3, %4 : vector<1x128xf32>
    %6 = arith.mulf %2, %2 : vector<1x128xf32>
    %7 = arith.subf %5, %6 : vector<1x128xf32>
    %c0_3 = arith.constant 0 : index
    %c0_4 = arith.constant 0 : index
    %8 = vector.load %arg4[%c0_3, %c0_4] : memref<1x128xf32, #tpu.memory_space<vmem>>, vector<1x128xf32>
    %cst_5 = arith.constant 9.99999974E-6 : f32
    %9 = vector.broadcast %cst_5 : f32 to vector<1x128xf32>
    %10 = arith.addf %7, %9 : vector<1x128xf32>
    %11 = math.rsqrt %10 : vector<1x128xf32>
    %12 = arith.mulf %8, %11 : vector<1x128xf32>
    %c0_6 = arith.constant 0 : index
    %c0_7 = arith.constant 0 : index
    %13 = vector.load %arg5[%c0_6, %c0_7] : memref<1x128xf32, #tpu.memory_space<vmem>>, vector<1x128xf32>
    %14 = arith.mulf %2, %12 : vector<1x128xf32>
    %15 = arith.subf %13, %14 : vector<1x128xf32>
    %c0_8 = arith.constant 0 : index
    %c0_9 = arith.constant 0 : index
    %16 = vector.load %arg2[%c0_8, %c0_9] : memref<128x128xf32, #tpu.memory_space<vmem>>, vector<128x128xf32>
    %17 = vector.broadcast %12 : vector<1x128xf32> to vector<128x128xf32>
    %18 = arith.mulf %16, %17 : vector<128x128xf32>
    %19 = vector.broadcast %15 : vector<1x128xf32> to vector<128x128xf32>
    %20 = arith.addf %18, %19 : vector<128x128xf32>
    %cst_10 = arith.constant 0.000000e+00 : f32
    %21 = vector.broadcast %cst_10 : f32 to vector<128x128xf32>
    %22 = arith.maximumf %20, %21 : vector<128x128xf32>
    %c0_11 = arith.constant 0 : index
    %c0_12 = arith.constant 0 : index
    %23 = vector.load %arg1[%c0_11, %c0_12] : memref<128x128xf32, #tpu.memory_space<vmem>>, vector<128x128xf32>
    %24 = arith.addf %23, %22 : vector<128x128xf32>
    %c0_13 = arith.constant 0 : index
    %c0_14 = arith.constant 0 : index
    %25 = vector.load %arg6[%c0_13, %c0_14] : memref<128x128xf32, #tpu.memory_space<vmem>>, vector<128x128xf32>
    tpu.vector_store %arg6[%c0_13, %c0_14], %24 {strides = array<i32>} : memref<128x128xf32, #tpu.memory_space<vmem>>, vector<128x128xf32>,
    return
  }
  func.func @transform_0(%arg0: i32) -> (i32, i32) {
    %c0_i32 = arith.constant 0 : i32
    %c0_i32_0 = arith.constant 0 : i32
    return %arg0, %c0_i32 : i32, i32
  }
  func.func @transform_1(%arg0: i32) -> (i32, i32) {
    %c0_i32 = arith.constant 0 : i32
    %c0_i32_0 = arith.constant 0 : i32
    return %arg0, %c0_i32 : i32, i32
  }
  func.func @transform_2(%arg0: i32) -> (i32, i32) {
    %c0_i32 = arith.constant 0 : i32
    %c0_i32_0 = arith.constant 0 : i32
    %c0_i32_1 = arith.constant 0 : i32
    return %c0_i32, %c0_i32_0 : i32, i32
  }
  func.func @transform_3(%arg0: i32) -> (i32, i32) {
    %c0_i32 = arith.constant 0 : i32
    %c0_i32_0 = arith.constant 0 : i32
    %c0_i32_1 = arith.constant 0 : i32
    return %c0_i32, %c0_i32_0 : i32, i32
  }
  func.func @transform_4(%arg0: i32) -> (i32, i32) {
    %c0_i32 = arith.constant 0 : i32
    %c0_i32_0 = arith.constant 0 : i32
    %c0_i32_1 = arith.constant 0 : i32
    return %c0_i32, %c0_i32_0 : i32, i32
  }
  func.func @transform_5(%arg0: i32) -> (i32, i32) {
    %c0_i32 = arith.constant 0 : i32
    %c0_i32_0 = arith.constant 0 : i32
    return %arg0, %c0_i32 : i32, i32
  }
}

</mosaic_0001>

<bundles_post_ra>
// kernel: linear_block.4
= control target key start
LH: loop header
LB: loop body
LE: loop exit
PB: predicated region body
PF: predicated region fallthrough
CT: control target
= control target key end

     0   :  { %12 = vsyncpa [#allocation3], 0  ;;  %s768_s21 = smov 0   ;;  %s887_s0 = inlined_call_operand.vmem [shape: f32[512,128], index: 0, kind: input, shape index: {}]   ;;  %s888_s1 = inlined_call_operand.vmem [shape: f32[2,128], index: 1, kind: input, shape index: {}]   ;;  %s889_s2 = inlined_call_operand.vmem [shape: f32[1,128], index: 2, kind: input, shape index: {}]   ;;  %s890_s3 = inlined_call_operand.vmem [shape: f32[1,128], index: 3, kind: input, shape index: {}]   ;;  %s891_s4 = inlined_call_operand.hbm [shape: f32[128,128], index: 4, kind: input, shape index: {}]   ;;  %s892_s5 = inlined_call_operand.vmem [shape: f32[512,128], index: 5, kind: output, shape index: {0}]   ;;  %s893_s6 = inlined_call_operand.vmem [shape: f32[2,128], index: 6, kind: output, shape index: {1}]  }
   0x1 LB: > { %s200_s24 = sshll.u32 %s891_s4, 4  ;;  %s601_s25 = sadd.s32 4294967295, %s727_s21   ;;  %s727_s21 = sphi %s768_s21, %s18_s21   ;;  %s201_s24 = int_to_ptr.hbm [resolvable:$true] %s200_s24 }
   0x2   : > { %p603_p0 = scmp.ge.s32.totalorder %s727_s21, 1  ;;  %p180_p1 = scmp.lt.s32.totalorder %s727_s21, 5 }
   0x3   : > { %p604_p2 = scmp.ne.s32.totalorder %s601_s25, 0  ;;  %p671_p3 = scmp.eq.s32.totalorder %s601_s25, 0 }
   0x4   : > { %p181_p4 = pnand %p603_p0, %p180_p1  ;;  %s729_s26 = smov [#allocation2]  }
   0x5   : > { %s202_s27 = sshll.u32 %s729_s26, 4  ;;  %s730_s28 = smov 128   ;;  %s203_s27 = int_to_ptr.vmem [resolvable:$true] %s202_s27 }
   0x6   : > { %p667_p5 = pneg %p181_p4  ;;  %s731_s29 = smov 8  }
   0x7   : > { %227 = sbr.rel (%p181_p4) target bundleno = 279 (0x117), region = 40 }
   0x8   : > { %p668_p6 = pnand %p671_p3, %p667_p5 }
   0xa   : > { %670 = dma.hbm_to_vmem [thread:$0]  (!%p668_p6), %s201_s24, 2048, %s203_s27, [#allocation3], %s730_s28, %s730_s28, %s731_s29  }
   0xc   : > { %722 = dma.done.wait (%p671_p3), [#allocation3], 2048  }
   0xd   : > { %724 = vsyncadd (%p671_p3), [#allocation3], 4294965248  ;;  %s608_s30 = sshll.u32 %s601_s25, 4 }
   0xe   : > { %p259_p7 = scmp.lt.s32.totalorder %s608_s30, 63  ;;  %273 = sbr.rel (%p604_p2) target bundleno = 21 (0x15), region = 48 }
  0x10   : > { %s895_s30 = smov (!%p259_p7, %s608_s30), 63 }
  0x11   : > { %s609_s7 = sshll.u32 %s895_s30, 3 }
  0x12   : > { %s782_s10 = scalar_lea.vmem %s887_s0, %s609_s7  ;;  %s787_s13 = scalar_lea.vmem %s892_s5, %s609_s7 }
  0x13   : > { %v732_v0 = vmov 0.0  }
  0x14   : > { %274 = vst [vmem:[%s893_s6] sm:$0x3] %v732_v0 }
  0x15 PF: > { %v382_v1 = vld [vmem:[#allocation2 + $0x78] sm:$0xff]  ;;  %v381_v2 = vld [vmem:[#allocation2 + $0x70] sm:$0xff]  ;;  %v275_v3 = vld [vmem:[%s888_s1] sm:$0x1]  ;;  %vm523_vm3 = vcmask 1040384  }
  0x16   : > { %383 = vmatpush.xpose.msra.mxu0 %v382_v1  ;;  %615 = vmatpush.xpose.msra.mxu1 %v382_v1  ;;  %v277_v4 = vld [vmem:[%s888_s1 + $0x1] sm:$0x1]  ;;  %v799_v5 = vmul.f32 0.001953125, %v275_v3  ;;  %v380_v7 = vld [vmem:[#allocation2 + $0x68] sm:$0xff]  ;;  %v378_v12 = vld [vmem:[#allocation2 + $0x58] sm:$0xff] }
  0x17   : > { %616 = vmatpush.xpose.msra.mxu2 %v382_v1  ;;  %617 = vmatpush.xpose.msra.mxu3 %v382_v1  ;;  %v278_v6 = vmul.f32 0.001953125, %v277_v4  ;;  %v379_v10 = vld [vmem:[#allocation2 + $0x60] sm:$0xff]  ;;  %v377_v14 = vld [vmem:[#allocation2 + $0x50] sm:$0xff]  ;;  %v376_v17 = vld [vmem:[#allocation2 + $0x48] sm:$0xff] }
  0x18   : > { %v279_v8 = vmul.f32 %v799_v5, %v799_v5  ;;  %v375_v19 = vld [vmem:[#allocation2 + $0x40] sm:$0xff]  ;;  %v374_v21 = vld [vmem:[#allocation2 + $0x38] sm:$0xff]  ;;  %v373_v23 = vld [vmem:[#allocation2 + $0x30] sm:$0xff] }
  0x19   : > { %v281_v24 = vld [vmem:[%s889_s2] sm:$0x1]  ;;  %v372_v26 = vld [vmem:[#allocation2 + $0x28] sm:$0xff]  ;;  %v370_v31 = vld [vmem:[#allocation2 + $0x18] sm:$0xff] }
  0x1a   : > { %384 = vmatpush.xpose.msra.mxu0 %v381_v2  ;;  %618 = vmatpush.xpose.msra.mxu1 %v381_v2  ;;  %v280_v9 = vsub.f32 %v278_v6, %v279_v8  ;;  %v371_v28 = vld [vmem:[#allocation2 + $0x20] sm:$0xff]  ;;  %v369_v36 = vld [vmem:[#allocation2 + $0x10] sm:$0xff]  ;;  %v368_v44 = vld [vmem:[#allocation2 + $0x8] sm:$0xff] }
  0x1b   : > { %619 = vmatpush.xpose.msra.mxu2 %v381_v2  ;;  %620 = vmatpush.xpose.msra.mxu3 %v381_v2  ;;  %v294_v30 = vld [vmem:[%s890_s3] sm:$0x1]  ;;  %v298_v47 = vld [vmem:[%s782_s10 + $0x8] sm:$0xff]  ;;  %v299_v0 = vld [vmem:[%s782_s10 + $0x10] sm:$0xff] }
  0x1c   : > { %v282_v11 = vadd.f32 1e-05, %v280_v9  ;;  %v297_v34 = vld [vmem:[%s782_s10] sm:$0xff]  ;;  %v302_v49 = vld [vmem:[%s782_s10 + $0x28] sm:$0xff]  ;;  %v303_v2 = vld [vmem:[%s782_s10 + $0x30] sm:$0xff] }
  0x1d   : > { %v301_v35 = vld [vmem:[%s782_s10 + $0x20] sm:$0xff]  ;;  %v306_v52 = vld [vmem:[%s782_s10 + $0x48] sm:$0xff]  ;;  %v307_v4 = vld [vmem:[%s782_s10 + $0x50] sm:$0xff] }
  0x1e   : > { %385 = vmatpush.xpose.msra.mxu0 %v380_v7  ;;  %621 = vmatpush.xpose.msra.mxu1 %v380_v7  ;;  %685 = vrsqrt.f32 %v282_v11  ;;  %vm289_vm0 = vweird.f32 %v282_v11  ;;  %v305_v37 = vld [vmem:[%s782_s10 + $0x40] sm:$0xff]  ;;  %v310_v53 = vld [vmem:[%s782_s10 + $0x68] sm:$0xff] }
  0x1f   : > { %622 = vmatpush.xpose.msra.mxu2 %v380_v7  ;;  %623 = vmatpush.xpose.msra.mxu3 %v380_v7  ;;  %v309_v38 = vld [vmem:[%s782_s10 + $0x60] sm:$0xff] }
  0x20   : > { %v367_v51 = vld [vmem:[#allocation2] sm:$0xff] }
  0x22   : > { %386 = vmatpush.xpose.msra.mxu0 %v379_v10  ;;  %624 = vmatpush.xpose.msra.mxu1 %v379_v10 }
  0x23   : > { %625 = vmatpush.xpose.msra.mxu2 %v379_v10  ;;  %626 = vmatpush.xpose.msra.mxu3 %v379_v10 }
  0x24   : > { %v686_v13 = vpop.eup %685 }
  0x25   : > { %v284_v15 = vmul.f32 %v686_v13, %v282_v11  ;;  %vm290_vm1 = vweird.f32 %v686_v13 }
  0x26   : > { %387 = vmatpush.xpose.msra.mxu0 %v378_v12  ;;  %627 = vmatpush.xpose.msra.mxu1 %v378_v12  ;;  %vm291_vm2 = vmor %vm289_vm0, %vm290_vm1 }
  0x27   : > { %628 = vmatpush.xpose.msra.mxu2 %v378_v12  ;;  %629 = vmatpush.xpose.msra.mxu3 %v378_v12  ;;  %v285_v16 = vmul.f32 %v686_v13, %v284_v15 }
  0x29   : > { %v286_v18 = vmul.f32 0.5, %v285_v16  ;;  %v300_v16 = vld [vmem:[%s782_s10 + $0x18] sm:$0xff] }
  0x2a   : > { %388 = vmatpush.xpose.msra.mxu0 %v377_v14  ;;  %630 = vmatpush.xpose.msra.mxu1 %v377_v14 }
  0x2b   : > { %631 = vmatpush.xpose.msra.mxu2 %v377_v14  ;;  %632 = vmatpush.xpose.msra.mxu3 %v377_v14  ;;  %v287_v20 = vsub.f32 1.5, %v286_v18  ;;  %v304_v18 = vld [vmem:[%s782_s10 + $0x38] sm:$0xff] }
  0x2d   : > { %v288_v22 = vmul.f32 %v686_v13, %v287_v20  ;;  %v308_v20 = vld [vmem:[%s782_s10 + $0x58] sm:$0xff] }
  0x2e   : > { %389 = vmatpush.xpose.msra.mxu0 %v376_v17  ;;  %633 = vmatpush.xpose.msra.mxu1 %v376_v17 }
  0x2f   : > { %634 = vmatpush.xpose.msra.mxu2 %v376_v17  ;;  %635 = vmatpush.xpose.msra.mxu3 %v376_v17  ;;  %v292_v25 = vsel %vm291_vm2, %v686_v13, %v288_v22 }
  0x30   : > { %v293_v27 = vmul.f32 %v292_v25, %v281_v24 }
  0x32   : > { %390 = vmatpush.xpose.msra.mxu0 %v375_v19  ;;  %636 = vmatpush.xpose.msra.mxu1 %v375_v19  ;;  %v295_v29 = vmul.f32 %v293_v27, %v799_v5  ;;  %v810_v33 = vperm.slane %v293_v27, 0  ;;  %v311_v5 = vld [vmem:[%s782_s10 + $0x70] sm:$0xff] }
  0x33   : > { %637 = vmatpush.xpose.msra.mxu2 %v375_v19  ;;  %638 = vmatpush.xpose.msra.mxu3 %v375_v19 }
  0x34   : > { %v296_v32 = vsub.f32 %v294_v30, %v295_v29  ;;  %v316_v39 = vmul.f32 %v810_v33, %v297_v34  ;;  %v320_v41 = vmul.f32 %v810_v33, %v301_v35  ;;  %v324_v42 = vmul.f32 %v810_v33, %v305_v37 }
  0x35   : > { %v328_v43 = vmul.f32 %v810_v33, %v309_v38  ;;  %v317_v55 = vmul.f32 %v810_v33, %v298_v47  ;;  %v321_v57 = vmul.f32 %v810_v33, %v302_v49  ;;  %v325_v59 = vmul.f32 %v810_v33, %v306_v52 }
  0x36   : > { %391 = vmatpush.xpose.msra.mxu0 %v374_v21  ;;  %639 = vmatpush.xpose.msra.mxu1 %v374_v21  ;;  %v817_v40 = vperm.slane %v296_v32, 0  ;;  %v329_v61 = vmul.f32 %v810_v33, %v310_v53  ;;  %v318_v7 = vmul.f32 %v810_v33, %v299_v0  ;;  %v322_v9 = vmul.f32 %v810_v33, %v303_v2 }
  0x37   : > { %640 = vmatpush.xpose.msra.mxu2 %v374_v21  ;;  %641 = vmatpush.xpose.msra.mxu3 %v374_v21  ;;  %v326_v11 = vmul.f32 %v810_v33, %v307_v4  ;;  %v330_v13 = vmul.f32 %v810_v33, %v311_v5  ;;  %v312_v21 = vld [vmem:[%s782_s10 + $0x78] sm:$0xff]  ;;  %v323_v25 = vmul.f32 %v810_v33, %v304_v18 }
  0x38   : > { %v335_v45 = vadd.f32 %v817_v40, %v316_v39  ;;  %v339_v46 = vadd.f32 %v817_v40, %v320_v41  ;;  %v343_v48 = vadd.f32 %v817_v40, %v324_v42  ;;  %v347_v50 = vadd.f32 %v817_v40, %v328_v43 }
  0x39   : > { %v336_v62 = vadd.f32 %v817_v40, %v317_v55  ;;  %v340_v63 = vadd.f32 %v817_v40, %v321_v57  ;;  %v344_v1 = vadd.f32 %v817_v40, %v325_v59  ;;  %v348_v3 = vadd.f32 %v817_v40, %v329_v61 }
  0x3a   : > { %392 = vmatpush.xpose.msra.mxu0 %v373_v23  ;;  %642 = vmatpush.xpose.msra.mxu1 %v373_v23  ;;  %v351_v54 = vmax.f32 %v335_v45, 0.0  ;;  %v355_v56 = vmax.f32 %v339_v46, 0.0  ;;  %v359_v58 = vmax.f32 %v343_v48, 0.0  ;;  %v363_v60 = vmax.f32 %v347_v50, 0.0 }
  0x3b   : > { %643 = vmatpush.xpose.msra.mxu2 %v373_v23  ;;  %644 = vmatpush.xpose.msra.mxu3 %v373_v23  ;;  %v352_v6 = vmax.f32 %v336_v62, 0.0  ;;  %v356_v8 = vmax.f32 %v340_v63, 0.0  ;;  %v360_v10 = vmax.f32 %v344_v1, 0.0  ;;  %v364_v12 = vmax.f32 %v348_v3, 0.0 }
  0x3c   : > { %v337_v14 = vadd.f32 %v817_v40, %v318_v7  ;;  %v341_v15 = vadd.f32 %v817_v40, %v322_v9  ;;  %v345_v17 = vadd.f32 %v817_v40, %v326_v11  ;;  %v349_v19 = vadd.f32 %v817_v40, %v330_v13 }
  0x3d   : > { %v319_v23 = vmul.f32 %v810_v33, %v300_v16  ;;  %v327_v27 = vmul.f32 %v810_v33, %v308_v20  ;;  %v331_v29 = vmul.f32 %v810_v33, %v312_v21 }
  0x3e   : > { %393 = vmatpush.xpose.msra.mxu0 %v372_v26  ;;  %645 = vmatpush.xpose.msra.mxu1 %v372_v26  ;;  %v353_v22 = vmax.f32 %v337_v14, 0.0  ;;  %v357_v24 = vmax.f32 %v341_v15, 0.0 }
  0x3f   : > { %646 = vmatpush.xpose.msra.mxu2 %v372_v26  ;;  %647 = vmatpush.xpose.msra.mxu3 %v372_v26  ;;  %v361_v26 = vmax.f32 %v345_v17, 0.0  ;;  %v338_v30 = vadd.f32 %v817_v40, %v319_v23  ;;  %v346_v32 = vadd.f32 %v817_v40, %v327_v27  ;;  %v350_v34 = vadd.f32 %v817_v40, %v331_v29 }
  0x41   : > { %v354_v35 = vmax.f32 %v338_v30, 0.0  ;;  %v362_v37 = vmax.f32 %v346_v32, 0.0  ;;  %v366_v33 = vmax.f32 %v350_v34, 0.0 }
  0x42   : > { %394 = vmatpush.xpose.msra.mxu0 %v371_v28  ;;  %648 = vmatpush.xpose.msra.mxu1 %v371_v28 }
  0x43   : > { %649 = vmatpush.xpose.msra.mxu2 %v371_v28  ;;  %650 = vmatpush.xpose.msra.mxu3 %v371_v28  ;;  %v365_v28 = vmax.f32 %v349_v19, 0.0 }
  0x46   : > { %395 = vmatpush.xpose.msra.mxu0 %v370_v31  ;;  %651 = vmatpush.xpose.msra.mxu1 %v370_v31 }
  0x47   : > { %652 = vmatpush.xpose.msra.mxu2 %v370_v31  ;;  %653 = vmatpush.xpose.msra.mxu3 %v370_v31  ;;  %v342_v31 = vadd.f32 %v817_v40, %v323_v25 }
  0x4a   : > { %396 = vmatpush.xpose.msra.mxu0 %v369_v36  ;;  %654 = vmatpush.xpose.msra.mxu1 %v369_v36 }
  0x4b   : > { %655 = vmatpush.xpose.msra.mxu2 %v369_v36  ;;  %656 = vmatpush.xpose.msra.mxu3 %v369_v36  ;;  %v358_v36 = vmax.f32 %v342_v31, 0.0 }
  0x4e   : > { %397 = vmatpush.xpose.msra.mxu0 %v368_v44  ;;  %657 = vmatpush.xpose.msra.mxu1 %v368_v44 }
  0x4f   : > { %658 = vmatpush.xpose.msra.mxu2 %v368_v44  ;;  %659 = vmatpush.xpose.msra.mxu3 %v368_v44 }
  0x52   : > { %398 = vmatpush.xpose.msra.mxu0 %v367_v51  ;;  %660 = vmatpush.xpose.msra.mxu1 %v367_v51 }
  0x53   : > { %661 = vmatpush.xpose.msra.mxu2 %v367_v51  ;;  %662 = vmatpush.xpose.msra.mxu3 %v367_v51 }
  0x55   : > { %399 = vmatmul.f32.vlgmr.msra.gmra.mxu0 %v351_v54  ;;  %411 = vmatmul.f32.vlgmr.msra.gmra.mxu1 %v355_v56 }
  0x56   : > { %423 = vmatmul.f32.vlgmr.msra.gmra.mxu2 %v359_v58  ;;  %435 = vmatmul.f32.vlgmr.msra.gmra.mxu3 %v363_v60 }
  0x5d   : > { %402 = vmatmul.f32.gmra.mxu0 %v352_v6  ;;  %414 = vmatmul.f32.gmra.mxu1 %v356_v8 }
  0x5e   : > { %426 = vmatmul.f32.gmra.mxu2 %v360_v10  ;;  %438 = vmatmul.f32.gmra.mxu3 %v364_v12 }
  0x65   : > { %405 = vmatmul.f32.gmra.mxu0 %v353_v22  ;;  %417 = vmatmul.f32.gmra.mxu1 %v357_v24 }
  0x66   : > { %429 = vmatmul.f32.gmra.mxu2 %v361_v26  ;;  %441 = vmatmul.f32.gmra.mxu3 %v365_v28 }
  0x6d   : > { %408 = vmatmul.f32.gmra.mxu0 %v354_v35  ;;  %420 = vmatmul.f32.gmra.mxu1 %v358_v36 }
  0x6e   : > { %432 = vmatmul.f32.gmra.mxu2 %v362_v37  ;;  %444 = vmatmul.f32.gmra.mxu3 %v366_v33 }
  0xd2   : > { %v400_v38 = vpop.f32.mrf.mxu0  ;;  %v412_v39 = vpop.f32.mrf.mxu1 }
  0xd3   : > { %448 = vst [vmem:[%s787_s13] sm:$0xff] %v400_v38  ;;  %v485_v49 = vmul.f32 %v400_v38, %v400_v38  ;;  %v489_v61 = vmul.f32 %v412_v39, %v412_v39 }
  0xd4   : > { %452 = vst [vmem:[%s787_s13 + $0x20] sm:$0xff] %v412_v39 }
  0xd9   : > { %v424_v40 = vpop.f32.mrf.mxu2  ;;  %v436_v41 = vpop.f32.mrf.mxu3 }
  0xda   : > { %v403_v42 = vpop.f32.mrf.mxu0  ;;  %v415_v43 = vpop.f32.mrf.mxu1  ;;  %456 = vst [vmem:[%s787_s13 + $0x40] sm:$0xff] %v424_v40  ;;  %v493_v11 = vmul.f32 %v424_v40, %v424_v40  ;;  %v497_v23 = vmul.f32 %v436_v41, %v436_v41 }
  0xdb   : > { %449 = vst [vmem:[%s787_s13 + $0x8] sm:$0xff] %v403_v42  ;;  %v486_v48 = vmul.f32 %v403_v42, %v403_v42  ;;  %v464_v50 = vadd.f32 %v403_v42, %v400_v38  ;;  %v490_v0 = vmul.f32 %v415_v43, %v415_v43 }
  0xdc   : > { %453 = vst [vmem:[%s787_s13 + $0x28] sm:$0xff] %v415_v43 }
  0xdd   : > { %460 = vst [vmem:[%s787_s13 + $0x60] sm:$0xff] %v436_v41  ;;  %v501_v52 = vadd.f32 %v486_v48, %v485_v49  ;;  %v522_v48 = vld [vmem:[%s893_s6] sm:$0x3] }
  0xe1   : > { %v427_v44 = vpop.f32.mrf.mxu2  ;;  %v439_v45 = vpop.f32.mrf.mxu3 }
  0xe2   : > { %v406_v46 = vpop.f32.mrf.mxu0  ;;  %v418_v47 = vpop.f32.mrf.mxu1  ;;  %457 = vst [vmem:[%s787_s13 + $0x48] sm:$0xff] %v427_v44  ;;  %v494_v14 = vmul.f32 %v427_v44, %v427_v44  ;;  %v498_v26 = vmul.f32 %v439_v45, %v439_v45 }
  0xe3   : > { %450 = vst [vmem:[%s787_s13 + $0x10] sm:$0xff] %v406_v46  ;;  %v487_v51 = vmul.f32 %v406_v46, %v406_v46  ;;  %v465_v53 = vadd.f32 %v464_v50, %v406_v46  ;;  %v491_v4 = vmul.f32 %v418_v47, %v418_v47 }
  0xe4   : > { %454 = vst [vmem:[%s787_s13 + $0x30] sm:$0xff] %v418_v47 }
  0xe5   : > { %461 = vst [vmem:[%s787_s13 + $0x68] sm:$0xff] %v439_v45  ;;  %v502_v58 = vadd.f32 %v501_v52, %v487_v51 }
  0xe9   : > { %v430_v54 = vpop.f32.mrf.mxu2  ;;  %v442_v55 = vpop.f32.mrf.mxu3 }
  0xea   : > { %v409_v56 = vpop.f32.mrf.mxu0  ;;  %v421_v57 = vpop.f32.mrf.mxu1  ;;  %458 = vst [vmem:[%s787_s13 + $0x50] sm:$0xff] %v430_v54  ;;  %v495_v18 = vmul.f32 %v430_v54, %v430_v54  ;;  %v499_v30 = vmul.f32 %v442_v55, %v442_v55 }
  0xeb   : > { %451 = vst [vmem:[%s787_s13 + $0x18] sm:$0xff] %v409_v56  ;;  %v466_v59 = vadd.f32 %v465_v53, %v409_v56  ;;  %v488_v60 = vmul.f32 %v409_v56, %v409_v56  ;;  %v492_v6 = vmul.f32 %v421_v57, %v421_v57 }
  0xec   : > { %455 = vst [vmem:[%s787_s13 + $0x38] sm:$0xff] %v421_v57 }
  0xed   : > { %v467_v62 = vadd.f32 %v466_v59, %v412_v39  ;;  %v503_v63 = vadd.f32 %v502_v58, %v488_v60  ;;  %462 = vst [vmem:[%s787_s13 + $0x70] sm:$0xff] %v442_v55 }
  0xef   : > { %v504_v1 = vadd.f32 %v503_v63, %v489_v61  ;;  %v468_v2 = vadd.f32 %v467_v62, %v415_v43 }
  0xf1   : > { %v469_v3 = vadd.f32 %v468_v2, %v418_v47  ;;  %v505_v5 = vadd.f32 %v504_v1, %v490_v0  ;;  %v433_v7 = vpop.f32.mrf.mxu2  ;;  %v445_v8 = vpop.f32.mrf.mxu3 }
  0xf2   : > { %459 = vst [vmem:[%s787_s13 + $0x58] sm:$0xff] %v433_v7  ;;  %v496_v20 = vmul.f32 %v433_v7, %v433_v7  ;;  %v500_v32 = vmul.f32 %v445_v8, %v445_v8 }
  0xf3   : > { %v506_v9 = vadd.f32 %v505_v5, %v491_v4  ;;  %v470_v10 = vadd.f32 %v469_v3, %v421_v57  ;;  %463 = vst [vmem:[%s787_s13 + $0x78] sm:$0xff] %v445_v8 }
  0xf5   : > { %v471_v12 = vadd.f32 %v470_v10, %v424_v40  ;;  %v507_v13 = vadd.f32 %v506_v9, %v492_v6 }
  0xf7   : > { %v508_v15 = vadd.f32 %v507_v13, %v493_v11  ;;  %v472_v16 = vadd.f32 %v471_v12, %v427_v44 }
  0xf9   : > { %v473_v17 = vadd.f32 %v472_v16, %v430_v54  ;;  %v509_v19 = vadd.f32 %v508_v15, %v494_v14 }
  0xfb   : > { %v510_v21 = vadd.f32 %v509_v19, %v495_v18  ;;  %v474_v22 = vadd.f32 %v473_v17, %v433_v7 }
  0xfd   : > { %v475_v24 = vadd.f32 %v474_v22, %v436_v41  ;;  %v511_v25 = vadd.f32 %v510_v21, %v496_v20 }
  0xff   : > { %v512_v27 = vadd.f32 %v511_v25, %v497_v23  ;;  %v476_v28 = vadd.f32 %v475_v24, %v439_v45 }
 0x101   : > { %v477_v29 = vadd.f32 %v476_v28, %v442_v55  ;;  %v513_v31 = vadd.f32 %v512_v27, %v498_v26 }
 0x103   : > { %v514_v34 = vadd.f32 %v513_v31, %v499_v30  ;;  %v478_v35 = vadd.f32 %v477_v29, %v445_v8 }
 0x105   : > { %v479_v36 = vrot.slane %v478_v35, 4  ;;  %v515_v37 = vadd.f32 %v514_v34, %v500_v32 }
 0x107   : > { %v480_v33 = vadd.f32 %v479_v36, %v478_v35  ;;  %v516_v38 = vrot.slane %v515_v37, 4 }
 0x109   : > { %v481_v39 = vrot.slane %v480_v33, 2  ;;  %v517_v40 = vadd.f32 %v516_v38, %v515_v37 }
 0x10b   : > { %v482_v42 = vadd.f32 %v481_v39, %v480_v33  ;;  %v518_v43 = vrot.slane %v517_v40, 2 }
 0x10d   : > { %v483_v44 = vrot.slane %v482_v42, 1  ;;  %v519_v41 = vadd.f32 %v518_v43, %v517_v40 }
 0x10f   : > { %v520_v46 = vrot.slane %v519_v41, 1  ;;  %v484_v47 = vadd.f32 %v483_v44, %v482_v42 }
 0x111   : > { %v521_v45 = vadd.f32 %v520_v46, %v519_v41 }
 0x113   : > { %v524_v49 = vsel %vm523_vm3, %v484_v47, %v521_v45 }
 0x114   : > { %v525_v50 = vadd.f32 %v524_v49, %v522_v48 }
 0x116   : > { %526 = vst [vmem:[%s893_s6] sm:$0x3] %v525_v50 }
 0x117 PF: > { %s18_s21 = sadd.s32 1, %s727_s21  }
 0x118   : > { %p15_p8 = scmp.ge.s32.totalorder %s18_s21, 6  }
 0x11a   :  { %17 = sbr.rel (!%p15_p8) target bundleno = 1 (0x1), region = 87 }
 0x11f   :  { %555 = vsyncpa [#allocation3], 1 }
 0x120   :  { %557 = vsyncpa [#allocation3 + $0x1], 1 }

// kernel: linear_block.3
= control target key start
LH: loop header
LB: loop body
LE: loop exit
PB: predicated region body
PF: predicated region fallthrough
CT: control target
= control target key end

     0   :  { %9 = vsyncpa [#allocation3], 0  ;;  %s872_s0 = inlined_call_operand.hbm [shape: f32[512,128], index: 0, kind: input, shape index: {}]   ;;  %s873_s1 = inlined_call_operand.hbm [shape: f32[128,128], index: 1, kind: input, shape index: {}]   ;;  %s874_s2 = inlined_call_operand.vmem [shape: f32[512,128], index: 2, kind: output, shape index: {0}]   ;;  %s875_s3 = inlined_call_operand.vmem [shape: f32[2,128], index: 3, kind: output, shape index: {1}]  }
   0x1   :  { %11 = vsyncpa [#allocation3 + $0x1], 0 }
   0x2   :  { %12 = vsyncpa [#allocation5], 0  ;;  %s716_s12 = smov 0   ;;  %s718_s13 = smov 0  }
   0x3   :  { %s720_s14 = smov 0   ;;  %s722_s15 = smov 0  }
   0x4 LB: > { %s735_s16 = sadd.s32 4294967295, %s690_s15   ;;  %p38_p0 = scmp.ne.s32.totalorder %s682_s13, %s678_s12  ;;  %s690_s15 = sphi %s722_s15, %s882_s15   ;;  %s686_s14 = sphi %s720_s14, %s881_s14   ;;  %s682_s13 = sphi %s718_s13, %s880_s13   ;;  %s678_s12 = sphi %s716_s12, %s879_s12  }
   0x5   : > { %p39_p1 = scmp.eq.s32.totalorder %s735_s16, 0  ;;  %p476_p2 = scmp.ge.s32.totalorder %s690_s15, 1 }
   0x6   : > { %p117_p3 = scmp.lt.s32.totalorder %s690_s15, 5  ;;  %p477_p4 = scmp.ne.s32.totalorder %s735_s16, 0 }
   0x7   : > { %p744_p5 = por %p39_p1, %p38_p0  ;;  %s128_s20 = sshll.u32 %s873_s1, 4  ;;  %s129_s20 = int_to_ptr.hbm [resolvable:$true] %s128_s20 }
   0x8   : > { %p751_p6 = pnand %p476_p2, %p117_p3  ;;  %s692_s22 = smov [#allocation4]  }
   0x9   : > { %s130_s23 = sshll.u32 %s692_s22, 4  ;;  %s760_s24 = sadd.s32 1, %s690_s15   ;;  %s131_s23 = int_to_ptr.vmem [resolvable:$true] %s130_s23 }
   0xa   : > { %p545_p7 = pneg %p751_p6  ;;  %s693_s25 = smov 128  }
   0xb   : > { %s694_s26 = smov 8   ;;  %s22_s27 = ssub.s32 %s690_s15, %s760_s24 }
   0xc   : > { %p546_p8 = pnand %p545_p7, %p39_p1  ;;  %s25_s28 = sadd.s32 1, %s686_s14 }
   0xd   : > { %p23_p9 = scmp.eq.s32.totalorder %s22_s27, 0  ;;  %p32_p10 = scmp.ne.s32.totalorder %s686_s14, %s682_s13 }
   0xe   : > { %548 = dma.hbm_to_vmem [thread:$0]  (!%p546_p8), %s129_s20, 2048, %s131_s23, [#allocation5], %s693_s25, %s693_s25, %s694_s26  }
   0xf   : > { %p33_p11 = scmp.eq.s32.totalorder %s690_s15, 0  ;;  %p554_p12 = scmp.lt.s32.totalorder %s690_s15, 4 }
  0x10   : > { %s773_s29 = scalar_select %p23_p9, %s686_s14, %s25_s28  }
  0x11   : > { %p34_p13 = por %p33_p11, %p32_p10  ;;  %s144_s30 = sand.u32 1, %s686_s14  }
  0x12   : > { %s479_s4 = sshll.u32 %s144_s30, 7  ;;  %s490_s5 = sshll.u32 %s690_s15, 7 }
  0x13   : > { %s153_s8 = scalar_lea.hbm %s872_s0, %s490_s5  ;;  %s148_s9 = scalar_lea.vmem [#allocation2], %s479_s4 }
  0x14   : > { %s156_s10 = sshll.u32 %s148_s9, 4  ;;  %s154_s11 = sshll.u32 %s153_s8, 4  ;;  %s157_s10 = int_to_ptr.vmem [resolvable:$true] %s156_s10  ;;  %s155_s11 = int_to_ptr.hbm [resolvable:$true] %s154_s11 }
  0x15   : > { %p780_p0 = pnand %p554_p12, %p34_p13  ;;  %s145_s18 = scalar_lea.sflag [#allocation3], %s144_s30 }
  0x16   : > { %s622_s19 = sshra.s32 %s155_s11, 4  ;;  %s629_s23 = scalar_lea.hbm %s872_s0, 512  ;;  %s623_s19 = int_to_ptr.hbm [resolvable:$true] %s622_s19 }
  0x17   : > { %s624_s20 = scalar_lea.hbm %s623_s19, 128  ;;  %p626_p3 = pneg %p780_p0 }
  0x18   : > { %p625_p2 = scmp.ne.s32.totalorder %s623_s19, %s624_s20  ;;  %p630_p9 = scmp.lt.s32.totalorder %s623_s19, %s872_s0 }
  0x19   : > { %p631_p10 = scmp.lt.s32.totalorder %s629_s23, %s624_s20 }
  0x1a   : > { %p627_p7 = pnand %p626_p3, %p625_p2 }
  0x1b   : > { %p632_p11 = por %p631_p10, %p630_p9 }
  0x1c   : > { %p628_p8 = pneg %p627_p7 }
  0x1e   : > { %p633_p12 = pnand %p632_p11, %p628_p8 }
  0x20   : > { %636 = shalt.err (!%p633_p12)
}
  0x21   : > { %552 = dma.hbm_to_vmem [thread:$0]  (!%p780_p0), %s155_s11, 2048, %s157_s10, %s145_s18, %s693_s25, %s693_s25, %s694_s26  }
  0x22   : > { %168 = sbr.rel (%p751_p6) target bundleno = 308 (0x134), region = 28  ;;  %s170_s30 = sand.u32 (!%p751_p6), 1, %s682_s13  }
  0x23   : > { %s483_s4 = sshll.u32 (!%p751_p6), %s170_s30, 7  ;;  %s171_s5 = scalar_lea.sflag (!%p751_p6), [#allocation3], %s170_s30 }
  0x24   : > { %s800_s6 = scalar_lea.vmem (!%p751_p6), [#allocation2], %s483_s4 }
  0x27   : > { %669 = dma.done.wait (%p744_p5), %s171_s5, 2048  }
  0x28   : > { %671 = vsyncadd (%p744_p5), %s171_s5, 4294965248 }
  0x29   : > { %673 = dma.done.wait (%p39_p1), [#allocation5], 2048  }
  0x2a   : > { %675 = vsyncadd (%p39_p1), [#allocation5], 4294965248  ;;  %s485_s21 = sshll.u32 %s735_s16, 4 }
  0x2b   : > { %p205_p6 = scmp.lt.s32.totalorder %s485_s21, 63  ;;  %213 = sbr.rel (%p477_p4) target bundleno = 50 (0x32), region = 40 }
  0x2d   : > { %s884_s21 = smov (!%p205_p6, %s485_s21), 63 }
  0x2e   : > { %s486_s25 = sshll.u32 %s884_s21, 3 }
  0x2f   : > { %s814_s8 = scalar_lea.vmem %s874_s2, %s486_s25 }
  0x30   : > { %v695_v0 = vmov 0.0  }
  0x31   : > { %214 = vst [vmem:[%s875_s3] sm:$0x3] %v695_v0 }
  0x32 PF: > { %v246_v1 = vld [vmem:[#allocation4 + $0x78] sm:$0xff]  ;;  %v245_v2 = vld [vmem:[#allocation4 + $0x70] sm:$0xff]  ;;  %v244_v3 = vld [vmem:[#allocation4 + $0x68] sm:$0xff]  ;;  %vm387_vm0 = vcmask 1040384  }
  0x33   : > { %247 = vmatpush.xpose.msra.mxu0 %v246_v1  ;;  %491 = vmatpush.xpose.msra.mxu1 %v246_v1  ;;  %v243_v4 = vld [vmem:[#allocation4 + $0x60] sm:$0xff]  ;;  %v242_v5 = vld [vmem:[#allocation4 + $0x58] sm:$0xff]  ;;  %v241_v6 = vld [vmem:[#allocation4 + $0x50] sm:$0xff] }
  0x34   : > { %492 = vmatpush.xpose.msra.mxu2 %v246_v1  ;;  %493 = vmatpush.xpose.msra.mxu3 %v246_v1  ;;  %v240_v7 = vld [vmem:[#allocation4 + $0x48] sm:$0xff]  ;;  %v239_v8 = vld [vmem:[#allocation4 + $0x40] sm:$0xff]  ;;  %v238_v9 = vld [vmem:[#allocation4 + $0x38] sm:$0xff] }
  0x35   : > { %v237_v10 = vld [vmem:[#allocation4 + $0x30] sm:$0xff]  ;;  %v236_v11 = vld [vmem:[#allocation4 + $0x28] sm:$0xff]  ;;  %v235_v12 = vld [vmem:[#allocation4 + $0x20] sm:$0xff] }
  0x36   : > { %v234_v13 = vld [vmem:[#allocation4 + $0x18] sm:$0xff]  ;;  %v233_v14 = vld [vmem:[#allocation4 + $0x10] sm:$0xff]  ;;  %v232_v15 = vld [vmem:[#allocation4 + $0x8] sm:$0xff] }
  0x37   : > { %248 = vmatpush.xpose.msra.mxu0 %v245_v2  ;;  %494 = vmatpush.xpose.msra.mxu1 %v245_v2  ;;  %v231_v16 = vld [vmem:[#allocation4] sm:$0xff]  ;;  %v216_v21 = vld [vmem:[%s800_s6 + $0x8] sm:$0xff]  ;;  %v217_v25 = vld [vmem:[%s800_s6 + $0x10] sm:$0xff] }
  0x38   : > { %495 = vmatpush.xpose.msra.mxu2 %v245_v2  ;;  %496 = vmatpush.xpose.msra.mxu3 %v245_v2  ;;  %v215_v17 = vld [vmem:[%s800_s6] sm:$0xff]  ;;  %v220_v22 = vld [vmem:[%s800_s6 + $0x28] sm:$0xff]  ;;  %v221_v26 = vld [vmem:[%s800_s6 + $0x30] sm:$0xff] }
  0x39   : > { %v219_v18 = vld [vmem:[%s800_s6 + $0x20] sm:$0xff]  ;;  %v224_v23 = vld [vmem:[%s800_s6 + $0x48] sm:$0xff]  ;;  %v225_v27 = vld [vmem:[%s800_s6 + $0x50] sm:$0xff] }
  0x3a   : > { %v223_v19 = vld [vmem:[%s800_s6 + $0x40] sm:$0xff]  ;;  %v228_v24 = vld [vmem:[%s800_s6 + $0x68] sm:$0xff]  ;;  %v229_v28 = vld [vmem:[%s800_s6 + $0x70] sm:$0xff] }
  0x3b   : > { %249 = vmatpush.xpose.msra.mxu0 %v244_v3  ;;  %497 = vmatpush.xpose.msra.mxu1 %v244_v3  ;;  %v227_v20 = vld [vmem:[%s800_s6 + $0x60] sm:$0xff]  ;;  %v218_v29 = vld [vmem:[%s800_s6 + $0x18] sm:$0xff] }
  0x3c   : > { %498 = vmatpush.xpose.msra.mxu2 %v244_v3  ;;  %499 = vmatpush.xpose.msra.mxu3 %v244_v3  ;;  %v222_v30 = vld [vmem:[%s800_s6 + $0x38] sm:$0xff] }
  0x3d   : > { %v226_v31 = vld [vmem:[%s800_s6 + $0x58] sm:$0xff] }
  0x3e   : > { %v230_v32 = vld [vmem:[%s800_s6 + $0x78] sm:$0xff] }
  0x3f   : > { %250 = vmatpush.xpose.msra.mxu0 %v243_v4  ;;  %500 = vmatpush.xpose.msra.mxu1 %v243_v4 }
  0x40   : > { %501 = vmatpush.xpose.msra.mxu2 %v243_v4  ;;  %502 = vmatpush.xpose.msra.mxu3 %v243_v4 }
  0x43   : > { %251 = vmatpush.xpose.msra.mxu0 %v242_v5  ;;  %503 = vmatpush.xpose.msra.mxu1 %v242_v5 }
  0x44   : > { %504 = vmatpush.xpose.msra.mxu2 %v242_v5  ;;  %505 = vmatpush.xpose.msra.mxu3 %v242_v5 }
  0x47   : > { %252 = vmatpush.xpose.msra.mxu0 %v241_v6  ;;  %506 = vmatpush.xpose.msra.mxu1 %v241_v6 }
  0x48   : > { %507 = vmatpush.xpose.msra.mxu2 %v241_v6  ;;  %508 = vmatpush.xpose.msra.mxu3 %v241_v6 }
  0x4b   : > { %253 = vmatpush.xpose.msra.mxu0 %v240_v7  ;;  %509 = vmatpush.xpose.msra.mxu1 %v240_v7 }
  0x4c   : > { %510 = vmatpush.xpose.msra.mxu2 %v240_v7  ;;  %511 = vmatpush.xpose.msra.mxu3 %v240_v7 }
  0x4f   : > { %254 = vmatpush.xpose.msra.mxu0 %v239_v8  ;;  %512 = vmatpush.xpose.msra.mxu1 %v239_v8 }
  0x50   : > { %513 = vmatpush.xpose.msra.mxu2 %v239_v8  ;;  %514 = vmatpush.xpose.msra.mxu3 %v239_v8 }
  0x53   : > { %255 = vmatpush.xpose.msra.mxu0 %v238_v9  ;;  %515 = vmatpush.xpose.msra.mxu1 %v238_v9 }
  0x54   : > { %516 = vmatpush.xpose.msra.mxu2 %v238_v9  ;;  %517 = vmatpush.xpose.msra.mxu3 %v238_v9 }
  0x57   : > { %256 = vmatpush.xpose.msra.mxu0 %v237_v10  ;;  %518 = vmatpush.xpose.msra.mxu1 %v237_v10 }
  0x58   : > { %519 = vmatpush.xpose.msra.mxu2 %v237_v10  ;;  %520 = vmatpush.xpose.msra.mxu3 %v237_v10 }
  0x5b   : > { %257 = vmatpush.xpose.msra.mxu0 %v236_v11  ;;  %521 = vmatpush.xpose.msra.mxu1 %v236_v11 }
  0x5c   : > { %522 = vmatpush.xpose.msra.mxu2 %v236_v11  ;;  %523 = vmatpush.xpose.msra.mxu3 %v236_v11 }
  0x5f   : > { %258 = vmatpush.xpose.msra.mxu0 %v235_v12  ;;  %524 = vmatpush.xpose.msra.mxu1 %v235_v12 }
  0x60   : > { %525 = vmatpush.xpose.msra.mxu2 %v235_v12  ;;  %526 = vmatpush.xpose.msra.mxu3 %v235_v12 }
  0x63   : > { %259 = vmatpush.xpose.msra.mxu0 %v234_v13  ;;  %527 = vmatpush.xpose.msra.mxu1 %v234_v13 }
  0x64   : > { %528 = vmatpush.xpose.msra.mxu2 %v234_v13  ;;  %529 = vmatpush.xpose.msra.mxu3 %v234_v13 }
  0x67   : > { %260 = vmatpush.xpose.msra.mxu0 %v233_v14  ;;  %530 = vmatpush.xpose.msra.mxu1 %v233_v14 }
  0x68   : > { %531 = vmatpush.xpose.msra.mxu2 %v233_v14  ;;  %532 = vmatpush.xpose.msra.mxu3 %v233_v14 }
  0x6b   : > { %261 = vmatpush.xpose.msra.mxu0 %v232_v15  ;;  %533 = vmatpush.xpose.msra.mxu1 %v232_v15 }
  0x6c   : > { %534 = vmatpush.xpose.msra.mxu2 %v232_v15  ;;  %535 = vmatpush.xpose.msra.mxu3 %v232_v15 }
  0x6f   : > { %262 = vmatpush.xpose.msra.mxu0 %v231_v16  ;;  %536 = vmatpush.xpose.msra.mxu1 %v231_v16 }
  0x70   : > { %537 = vmatpush.xpose.msra.mxu2 %v231_v16  ;;  %538 = vmatpush.xpose.msra.mxu3 %v231_v16 }
  0x72   : > { %263 = vmatmul.f32.vlgmr.msra.gmra.mxu0 %v215_v17  ;;  %275 = vmatmul.f32.vlgmr.msra.gmra.mxu1 %v219_v18 }
  0x73   : > { %287 = vmatmul.f32.vlgmr.msra.gmra.mxu2 %v223_v19  ;;  %299 = vmatmul.f32.vlgmr.msra.gmra.mxu3 %v227_v20 }
  0x7a   : > { %266 = vmatmul.f32.gmra.mxu0 %v216_v21  ;;  %278 = vmatmul.f32.gmra.mxu1 %v220_v22 }
  0x7b   : > { %290 = vmatmul.f32.gmra.mxu2 %v224_v23  ;;  %302 = vmatmul.f32.gmra.mxu3 %v228_v24 }
  0x82   : > { %269 = vmatmul.f32.gmra.mxu0 %v217_v25  ;;  %281 = vmatmul.f32.gmra.mxu1 %v221_v26 }
  0x83   : > { %293 = vmatmul.f32.gmra.mxu2 %v225_v27  ;;  %305 = vmatmul.f32.gmra.mxu3 %v229_v28 }
  0x8a   : > { %272 = vmatmul.f32.gmra.mxu0 %v218_v29  ;;  %284 = vmatmul.f32.gmra.mxu1 %v222_v30 }
  0x8b   : > { %296 = vmatmul.f32.gmra.mxu2 %v226_v31  ;;  %308 = vmatmul.f32.gmra.mxu3 %v230_v32 }
  0xef   : > { %v264_v33 = vpop.f32.mrf.mxu0  ;;  %v276_v34 = vpop.f32.mrf.mxu1 }
  0xf0   : > { %312 = vst [vmem:[%s814_s8] sm:$0xff] %v264_v33  ;;  %v349_v44 = vmul.f32 %v264_v33, %v264_v33  ;;  %v353_v56 = vmul.f32 %v276_v34, %v276_v34 }
  0xf1   : > { %316 = vst [vmem:[%s814_s8 + $0x20] sm:$0xff] %v276_v34 }
  0xf6   : > { %v288_v35 = vpop.f32.mrf.mxu2  ;;  %v300_v36 = vpop.f32.mrf.mxu3 }
  0xf7   : > { %v267_v37 = vpop.f32.mrf.mxu0  ;;  %v279_v38 = vpop.f32.mrf.mxu1  ;;  %320 = vst [vmem:[%s814_s8 + $0x40] sm:$0xff] %v288_v35  ;;  %v357_v6 = vmul.f32 %v288_v35, %v288_v35  ;;  %v361_v18 = vmul.f32 %v300_v36, %v300_v36 }
  0xf8   : > { %313 = vst [vmem:[%s814_s8 + $0x8] sm:$0xff] %v267_v37  ;;  %v350_v43 = vmul.f32 %v267_v37, %v267_v37  ;;  %v328_v45 = vadd.f32 %v267_v37, %v264_v33  ;;  %v354_v59 = vmul.f32 %v279_v38, %v279_v38 }
  0xf9   : > { %317 = vst [vmem:[%s814_s8 + $0x28] sm:$0xff] %v279_v38 }
  0xfa   : > { %324 = vst [vmem:[%s814_s8 + $0x60] sm:$0xff] %v300_v36  ;;  %v365_v47 = vadd.f32 %v350_v43, %v349_v44  ;;  %v386_v43 = vld [vmem:[%s875_s3] sm:$0x3] }
  0xfe   : > { %v291_v39 = vpop.f32.mrf.mxu2  ;;  %v303_v40 = vpop.f32.mrf.mxu3 }
  0xff   : > { %v270_v41 = vpop.f32.mrf.mxu0  ;;  %v282_v42 = vpop.f32.mrf.mxu1  ;;  %321 = vst [vmem:[%s814_s8 + $0x48] sm:$0xff] %v291_v39  ;;  %v358_v9 = vmul.f32 %v291_v39, %v291_v39  ;;  %v362_v21 = vmul.f32 %v303_v40, %v303_v40 }
 0x100   : > { %314 = vst [vmem:[%s814_s8 + $0x10] sm:$0xff] %v270_v41  ;;  %v351_v46 = vmul.f32 %v270_v41, %v270_v41  ;;  %v329_v48 = vadd.f32 %v328_v45, %v270_v41  ;;  %v355_v63 = vmul.f32 %v282_v42, %v282_v42 }
 0x101   : > { %318 = vst [vmem:[%s814_s8 + $0x30] sm:$0xff] %v282_v42 }
 0x102   : > { %325 = vst [vmem:[%s814_s8 + $0x68] sm:$0xff] %v303_v40  ;;  %v366_v53 = vadd.f32 %v365_v47, %v351_v46 }
 0x106   : > { %v294_v49 = vpop.f32.mrf.mxu2  ;;  %v306_v50 = vpop.f32.mrf.mxu3 }
 0x107   : > { %v273_v51 = vpop.f32.mrf.mxu0  ;;  %v285_v52 = vpop.f32.mrf.mxu1  ;;  %322 = vst [vmem:[%s814_s8 + $0x50] sm:$0xff] %v294_v49  ;;  %v359_v13 = vmul.f32 %v294_v49, %v294_v49  ;;  %v363_v25 = vmul.f32 %v306_v50, %v306_v50 }
 0x108   : > { %315 = vst [vmem:[%s814_s8 + $0x18] sm:$0xff] %v273_v51  ;;  %v330_v54 = vadd.f32 %v329_v48, %v273_v51  ;;  %v352_v55 = vmul.f32 %v273_v51, %v273_v51  ;;  %v356_v1 = vmul.f32 %v285_v52, %v285_v52 }
 0x109   : > { %319 = vst [vmem:[%s814_s8 + $0x38] sm:$0xff] %v285_v52 }
 0x10a   : > { %v331_v57 = vadd.f32 %v330_v54, %v276_v34  ;;  %v367_v58 = vadd.f32 %v366_v53, %v352_v55  ;;  %326 = vst [vmem:[%s814_s8 + $0x70] sm:$0xff] %v306_v50 }
 0x10c   : > { %v368_v60 = vadd.f32 %v367_v58, %v353_v56  ;;  %v332_v61 = vadd.f32 %v331_v57, %v279_v38 }
 0x10e   : > { %v333_v62 = vadd.f32 %v332_v61, %v282_v42  ;;  %v369_v0 = vadd.f32 %v368_v60, %v354_v59  ;;  %v297_v2 = vpop.f32.mrf.mxu2  ;;  %v309_v3 = vpop.f32.mrf.mxu3 }
 0x10f   : > { %323 = vst [vmem:[%s814_s8 + $0x58] sm:$0xff] %v297_v2  ;;  %v360_v15 = vmul.f32 %v297_v2, %v297_v2  ;;  %v364_v27 = vmul.f32 %v309_v3, %v309_v3 }
 0x110   : > { %v370_v4 = vadd.f32 %v369_v0, %v355_v63  ;;  %v334_v5 = vadd.f32 %v333_v62, %v285_v52  ;;  %327 = vst [vmem:[%s814_s8 + $0x78] sm:$0xff] %v309_v3 }
 0x112   : > { %v335_v7 = vadd.f32 %v334_v5, %v288_v35  ;;  %v371_v8 = vadd.f32 %v370_v4, %v356_v1 }
 0x114   : > { %v372_v10 = vadd.f32 %v371_v8, %v357_v6  ;;  %v336_v11 = vadd.f32 %v335_v7, %v291_v39 }
 0x116   : > { %v337_v12 = vadd.f32 %v336_v11, %v294_v49  ;;  %v373_v14 = vadd.f32 %v372_v10, %v358_v9 }
 0x118   : > { %v374_v16 = vadd.f32 %v373_v14, %v359_v13  ;;  %v338_v17 = vadd.f32 %v337_v12, %v297_v2 }
 0x11a   : > { %v339_v19 = vadd.f32 %v338_v17, %v300_v36  ;;  %v375_v20 = vadd.f32 %v374_v16, %v360_v15 }
 0x11c   : > { %v376_v22 = vadd.f32 %v375_v20, %v361_v18  ;;  %v340_v23 = vadd.f32 %v339_v19, %v303_v40 }
 0x11e   : > { %v341_v24 = vadd.f32 %v340_v23, %v306_v50  ;;  %v377_v26 = vadd.f32 %v376_v22, %v362_v21 }
 0x120   : > { %v378_v28 = vadd.f32 %v377_v26, %v363_v25  ;;  %v342_v29 = vadd.f32 %v341_v24, %v309_v3 }
 0x122   : > { %v343_v30 = vrot.slane %v342_v29, 4  ;;  %v379_v31 = vadd.f32 %v378_v28, %v364_v27 }
 0x124   : > { %v344_v32 = vadd.f32 %v343_v30, %v342_v29  ;;  %v380_v33 = vrot.slane %v379_v31, 4 }
 0x126   : > { %v345_v34 = vrot.slane %v344_v32, 2  ;;  %v381_v35 = vadd.f32 %v380_v33, %v379_v31 }
 0x128   : > { %v346_v37 = vadd.f32 %v345_v34, %v344_v32  ;;  %v382_v38 = vrot.slane %v381_v35, 2 }
 0x12a   : > { %v347_v39 = vrot.slane %v346_v37, 1  ;;  %v383_v36 = vadd.f32 %v382_v38, %v381_v35 }
 0x12c   : > { %v384_v41 = vrot.slane %v383_v36, 1  ;;  %v348_v42 = vadd.f32 %v347_v39, %v346_v37 }
 0x12e   : > { %v385_v40 = vadd.f32 %v384_v41, %v383_v36 }
 0x130   : > { %v388_v44 = vsel %vm387_vm0, %v348_v42, %v385_v40 }
 0x131   : > { %v389_v45 = vadd.f32 %v388_v44, %v386_v43 }
 0x133   : > { %390 = vst [vmem:[%s875_s3] sm:$0x3] %v389_v45 }
 0x134 PF: > { %p15_p1 = scmp.ge.s32.totalorder %s760_s24, 6   ;;  %s879_s12 = smov %s682_s13 }
 0x135   : > { %s880_s13 = smov %s686_s14  ;;  %s881_s14 = smov %s773_s29 }
 0x136   : > { %s882_s15 = smov %s760_s24  ;;  %17 = sbr.rel (!%p15_p1) target bundleno = 4 (0x4), region = 84 }
 0x13b   :  { %419 = vsyncpa [#allocation3], 1 }
 0x13c   :  { %421 = vsyncpa [#allocation3 + $0x1], 1 }
 0x13d   :  { %422 = vsyncpa [#allocation5], 1 }

// kernel: linear_block.5
= control target key start
LH: loop header
LB: loop body
LE: loop exit
PB: predicated region body
PF: predicated region fallthrough
CT: control target
= control target key end

     0   :  { %10 = vsyncpa [#allocation3], 0  ;;  %s948_s0 = inlined_call_operand.hbm [shape: f32[512,128], index: 0, kind: input, shape index: {}]   ;;  %s949_s1 = inlined_call_operand.vmem [shape: f32[512,128], index: 1, kind: input, shape index: {}]   ;;  %s950_s2 = inlined_call_operand.vmem [shape: f32[2,128], index: 2, kind: input, shape index: {}]   ;;  %s951_s3 = inlined_call_operand.vmem [shape: f32[1,128], index: 3, kind: input, shape index: {}]   ;;  %s952_s4 = inlined_call_operand.vmem [shape: f32[1,128], index: 4, kind: input, shape index: {}]   ;;  %s953_s5 = inlined_call_operand.hbm [shape: f32[512,128], index: 5, kind: output, shape index: {}]  }
   0x1   :  { %12 = vsyncpa [#allocation3 + $0x1], 0 }
   0x2   :  { %13 = vsyncpa [#allocation4], 0 }
   0x3   :  { %15 = vsyncpa [#allocation4 + $0x1], 0  ;;  %s712_s18 = smov 0   ;;  %s714_s19 = smov 0  }
   0x4   :  { %s716_s20 = smov 0   ;;  %s718_s21 = smov 0  }
   0x5 LB: > { %s733_s22 = sadd.s32 4294967295, %s676_s21   ;;  %s510_s23 = sadd.s32 4294967294, %s676_s21   ;;  %s676_s21 = sphi %s718_s21, %s962_s21   ;;  %s672_s20 = sphi %s716_s20, %s961_s20   ;;  %s668_s19 = sphi %s714_s19, %s960_s19   ;;  %s664_s18 = sphi %s712_s18, %s959_s18  }
   0x6   : > { %s737_s24 = sadd.s32 1, %s676_s21   ;;  %s28_s25 = sadd.s32 1, %s672_s20 }
   0x7   : > { %s25_s26 = ssub.s32 %s676_s21, %s737_s24  ;;  %p35_p0 = scmp.ne.s32.totalorder %s672_s20, %s668_s19 }
   0x8   : > { %p26_p1 = scmp.eq.s32.totalorder %s25_s26, 0  ;;  %p36_p2 = scmp.eq.s32.totalorder %s676_s21, 0 }
   0x9   : > { %p41_p3 = scmp.ne.s32.totalorder %s668_s19, %s664_s18  ;;  %p42_p4 = scmp.eq.s32.totalorder %s733_s22, 0 }
   0xa   : > { %s749_s27 = scalar_select %p26_p1, %s672_s20, %s28_s25  }
   0xb   : > { %p751_p5 = por %p36_p2, %p35_p0  ;;  %p755_p6 = por %p42_p4, %p41_p3 }
   0xc   : > { %p154_p7 = scmp.eq.s32.totalorder %s733_s22, 3  ;;  %p160_p8 = scmp.eq.s32.totalorder %s510_s23, 3 }
   0xd   : > { %p540_p9 = scmp.lt.s32.totalorder %s676_s21, 4  ;;  %s189_s7 = sand.u32 1, %s672_s20  }
   0xe   : > { %p761_p10 = por %p154_p7, %p35_p0  ;;  %p765_p11 = por %p160_p8, %p41_p3 }
   0xf   : > { %s526_s8 = sshll.u32 %s676_s21, 7  ;;  %s513_s9 = sshll.u32 %s189_s7, 7 }
  0x10   : > { %s198_s12 = scalar_lea.hbm %s948_s0, %s526_s8  ;;  %s193_s14 = scalar_lea.vmem [#allocation2], %s513_s9 }
  0x11   : > { %s199_s13 = sshll.u32 %s198_s12, 4  ;;  %s201_s15 = sshll.u32 %s193_s14, 4  ;;  %s200_s13 = int_to_ptr.hbm [resolvable:$true] %s199_s13  ;;  %s202_s15 = int_to_ptr.vmem [resolvable:$true] %s201_s15 }
  0x12   : > { %p776_p12 = pnand %p540_p9, %p751_p5  ;;  %p516_p13 = scmp.ge.s32.totalorder %s676_s21, 1 }
  0x13   : > { %p218_p0 = scmp.lt.s32.totalorder %s676_s21, 5  ;;  %s190_s17 = scalar_lea.sflag [#allocation3], %s189_s7 }
  0x14   : > { %s580_s23 = sshra.s32 %s200_s13, 4  ;;  %p584_p2 = pneg %p776_p12  ;;  %s581_s23 = int_to_ptr.hbm [resolvable:$true] %s580_s23 }
  0x15   : > { %s582_s25 = scalar_lea.hbm %s581_s23, 128  ;;  %s587_s28 = scalar_lea.hbm %s948_s0, 512 }
  0x16   : > { %p583_p1 = scmp.ne.s32.totalorder %s581_s23, %s582_s25  ;;  %p588_p5 = scmp.lt.s32.totalorder %s581_s23, %s948_s0 }
  0x17   : > { %p589_p7 = scmp.lt.s32.totalorder %s587_s28, %s582_s25 }
  0x18   : > { %p585_p3 = pnand %p584_p2, %p583_p1 }
  0x19   : > { %p590_p8 = por %p589_p7, %p588_p5 }
  0x1a   : > { %p586_p4 = pneg %p585_p3 }
  0x1c   : > { %p591_p9 = pnand %p590_p8, %p586_p4 }
  0x1e   : > { %594 = shalt.err (!%p591_p9)
}
  0x1f   : > { %s678_s7 = smov 128   ;;  %s679_s11 = smov 8  }
  0x20   : > { %535 = dma.hbm_to_vmem [thread:$0]  (!%p776_p12), %s200_s13, 2048, %s202_s15, %s190_s17, %s678_s7, %s678_s7, %s679_s11  }
  0x21   : > { %p219_p1 = pnand %p516_p13, %p218_p0 }
  0x22   : > { %s797_s12 = sand.u32 (!%p219_p1), 1, %s668_s19  }
  0x23   : > { %222 = sbr.rel (%p219_p1) target bundleno = 101 (0x65), region = 40  ;;  %s517_s14 = sshll.u32 (!%p219_p1), %s797_s12, 7 }
  0x24   : > { %s225_s23 = scalar_lea.sflag (!%p219_p1), [#allocation3], %s797_s12  ;;  %s803_s25 = scalar_lea.vmem (!%p219_p1), [#allocation2], %s517_s14 }
  0x28   : > { %655 = dma.done.wait (%p755_p6), %s225_s23, 2048  }
  0x29   : > { %657 = vsyncadd (%p755_p6), %s225_s23, 4294965248  ;;  %v269_v0 = vld [vmem:[%s950_s2] sm:$0x1]  ;;  %v271_v1 = vld [vmem:[%s950_s2 + $0x1] sm:$0x1]  ;;  %s519_s26 = sshll.u32 %s733_s22, 4 }
  0x2a   : > { %v270_v2 = vmul.f32 0.001953125, %v269_v0  ;;  %v272_v3 = vmul.f32 0.001953125, %v271_v1  ;;  %p263_p12 = scmp.lt.s32.totalorder %s519_s26, 63  ;;  %v275_v12 = vld [vmem:[%s951_s3] sm:$0x1]  ;;  %v362_v52 = vld [vmem:[%s803_s25 + $0x8] sm:$0xff] }
  0x2b   : > { %v288_v16 = vld [vmem:[%s952_s4] sm:$0x1]  ;;  %v363_v53 = vld [vmem:[%s803_s25 + $0x10] sm:$0xff]  ;;  %v364_v54 = vld [vmem:[%s803_s25 + $0x18] sm:$0xff]  ;;  %s878_s13 = scalar_lea.vmem [#allocation5], %s517_s14  ;;  %s527_s14 = sshll.u32 %s733_s22, 7 }
  0x2c   : > { %v273_v4 = vmul.f32 %v270_v2, %v270_v2  ;;  %s964_s26 = smov (!%p263_p12, %s519_s26), 63  ;;  %v361_v46 = vld [vmem:[%s803_s25] sm:$0xff]  ;;  %v366_v0 = vld [vmem:[%s803_s25 + $0x28] sm:$0xff]  ;;  %s421_s16 = scalar_lea.hbm %s953_s5, %s527_s14 }
  0x2d   : > { %s520_s29 = sshll.u32 %s964_s26, 3  ;;  %v365_v63 = vld [vmem:[%s803_s25 + $0x20] sm:$0xff]  ;;  %s422_s17 = sshll.u32 %s878_s13, 4  ;;  %s423_s17 = int_to_ptr.vmem [resolvable:$true] %s422_s17 }
  0x2e   : > { %v274_v5 = vsub.f32 %v272_v3, %v273_v4  ;;  %s819_s9 = scalar_lea.vmem %s949_s1, %s520_s29  ;;  %s424_s26 = sshll.u32 %s421_s16, 4  ;;  %s425_s26 = int_to_ptr.hbm [resolvable:$true] %s424_s26 }
  0x2f   : > { %v291_v17 = vld [vmem:[%s819_s9] sm:$0xff]  ;;  %v292_v18 = vld [vmem:[%s819_s9 + $0x8] sm:$0xff]  ;;  %v293_v19 = vld [vmem:[%s819_s9 + $0x10] sm:$0xff]  ;;  %s410_s29 = scalar_lea.sflag [#allocation4], %s797_s12  ;;  %s624_s8 = sshra.s32 %s425_s26, 4  ;;  %s625_s8 = int_to_ptr.hbm [resolvable:$true] %s624_s8 }
  0x30   : > { %v276_v6 = vadd.f32 1e-05, %v274_v5  ;;  %v294_v20 = vld [vmem:[%s819_s9 + $0x18] sm:$0xff]  ;;  %v295_v23 = vld [vmem:[%s819_s9 + $0x20] sm:$0xff]  ;;  %v296_v24 = vld [vmem:[%s819_s9 + $0x28] sm:$0xff]  ;;  %s626_s28 = scalar_lea.hbm %s625_s8, 128  ;;  %p631_p2 = scmp.lt.s32.totalorder %s625_s8, %s953_s5 }
  0x31   : > { %v297_v25 = vld [vmem:[%s819_s9 + $0x30] sm:$0xff]  ;;  %v298_v26 = vld [vmem:[%s819_s9 + $0x38] sm:$0xff]  ;;  %v299_v27 = vld [vmem:[%s819_s9 + $0x40] sm:$0xff]  ;;  %p627_p6 = scmp.ne.s32.totalorder %s625_s8, %s626_s28  ;;  %s630_s10 = scalar_lea.hbm %s953_s5, 512 }
  0x32   : > { %578 = vrsqrt.f32 %v276_v6  ;;  %vm283_vm0 = vweird.f32 %v276_v6  ;;  %v300_v32 = vld [vmem:[%s819_s9 + $0x48] sm:$0xff]  ;;  %v301_v33 = vld [vmem:[%s819_s9 + $0x50] sm:$0xff]  ;;  %v302_v34 = vld [vmem:[%s819_s9 + $0x58] sm:$0xff]  ;;  %p632_p3 = scmp.lt.s32.totalorder %s630_s10, %s626_s28 }
  0x33   : > { %v303_v50 = vld [vmem:[%s819_s9 + $0x60] sm:$0xff]  ;;  %v304_v51 = vld [vmem:[%s819_s9 + $0x68] sm:$0xff]  ;;  %p628_p13 = pnand %p627_p6, %p761_p10 }
  0x34   : > { %p633_p4 = por %p632_p3, %p631_p2 }
  0x35   : > { %p629_p0 = pneg %p628_p13 }
  0x37   : > { %p634_p5 = pnand %p633_p4, %p629_p0 }
  0x38   : > { %v579_v7 = vpop.eup %578 }
  0x39   : > { %v278_v8 = vmul.f32 %v579_v7, %v276_v6  ;;  %vm284_vm1 = vweird.f32 %v579_v7 }
  0x3a   : > { %vm285_vm2 = vmor %vm283_vm0, %vm284_vm1 }
  0x3b   : > { %v279_v9 = vmul.f32 %v579_v7, %v278_v8 }
  0x3d   : > { %v280_v10 = vmul.f32 0.5, %v279_v9  ;;  %v305_v9 = vld [vmem:[%s819_s9 + $0x70] sm:$0xff] }
  0x3f   : > { %v281_v11 = vsub.f32 1.5, %v280_v10  ;;  %v306_v10 = vld [vmem:[%s819_s9 + $0x78] sm:$0xff] }
  0x41   : > { %v282_v13 = vmul.f32 %v579_v7, %v281_v11 }
  0x43   : > { %v286_v14 = vsel %vm285_vm2, %v579_v7, %v282_v13 }
  0x44   : > { %v287_v15 = vmul.f32 %v286_v14, %v275_v12  ;;  %v367_v14 = vld [vmem:[%s803_s25 + $0x30] sm:$0xff] }
  0x46   : > { %v289_v21 = vmul.f32 %v287_v15, %v270_v2  ;;  %v831_v22 = vperm.slane %v287_v15, 0 }
  0x48   : > { %v290_v28 = vsub.f32 %v288_v16, %v289_v21  ;;  %v310_v29 = vmul.f32 %v831_v22, %v291_v17  ;;  %v311_v30 = vmul.f32 %v831_v22, %v292_v18  ;;  %v312_v31 = vmul.f32 %v831_v22, %v293_v19  ;;  %v368_v16 = vld [vmem:[%s803_s25 + $0x38] sm:$0xff]  ;;  %v369_v21 = vld [vmem:[%s803_s25 + $0x40] sm:$0xff] }
  0x49   : > { %v313_v35 = vmul.f32 %v831_v22, %v294_v20  ;;  %v314_v36 = vmul.f32 %v831_v22, %v295_v23  ;;  %v315_v37 = vmul.f32 %v831_v22, %v296_v24  ;;  %v316_v38 = vmul.f32 %v831_v22, %v297_v25 }
  0x4a   : > { %v848_v39 = vperm.slane %v290_v28, 0  ;;  %v317_v40 = vmul.f32 %v831_v22, %v298_v26  ;;  %v318_v41 = vmul.f32 %v831_v22, %v299_v27  ;;  %v319_v42 = vmul.f32 %v831_v22, %v300_v32 }
  0x4b   : > { %v320_v43 = vmul.f32 %v831_v22, %v301_v33  ;;  %v321_v44 = vmul.f32 %v831_v22, %v302_v34  ;;  %v322_v3 = vmul.f32 %v831_v22, %v303_v50  ;;  %v323_v4 = vmul.f32 %v831_v22, %v304_v51  ;;  %v371_v33 = vld [vmem:[%s803_s25 + $0x50] sm:$0xff] }
  0x4c   : > { %v329_v45 = vadd.f32 %v848_v39, %v310_v29  ;;  %v330_v47 = vadd.f32 %v848_v39, %v311_v30  ;;  %v331_v48 = vadd.f32 %v848_v39, %v312_v31  ;;  %v332_v49 = vadd.f32 %v848_v39, %v313_v35  ;;  %v370_v30 = vld [vmem:[%s803_s25 + $0x48] sm:$0xff] }
  0x4d   : > { %v333_v55 = vadd.f32 %v848_v39, %v314_v36  ;;  %v334_v56 = vadd.f32 %v848_v39, %v315_v37  ;;  %v335_v57 = vadd.f32 %v848_v39, %v316_v38  ;;  %v336_v58 = vadd.f32 %v848_v39, %v317_v40  ;;  %v372_v37 = vld [vmem:[%s803_s25 + $0x58] sm:$0xff] }
  0x4e   : > { %v345_v59 = vmax.f32 %v329_v45, 0.0  ;;  %v346_v60 = vmax.f32 %v330_v47, 0.0  ;;  %v347_v61 = vmax.f32 %v331_v48, 0.0  ;;  %v348_v62 = vmax.f32 %v332_v49, 0.0  ;;  %v376_v49 = vld [vmem:[%s803_s25 + $0x78] sm:$0xff] }
  0x4f   : > { %v349_v1 = vmax.f32 %v333_v55, 0.0  ;;  %v350_v2 = vmax.f32 %v334_v56, 0.0  ;;  %v351_v8 = vmax.f32 %v335_v57, 0.0  ;;  %v352_v15 = vmax.f32 %v336_v58, 0.0 }
  0x50   : > { %v377_v5 = vadd.f32 %v361_v46, %v345_v59  ;;  %v378_v6 = vadd.f32 %v362_v52, %v346_v60  ;;  %v379_v7 = vadd.f32 %v363_v53, %v347_v61  ;;  %v380_v11 = vadd.f32 %v364_v54, %v348_v62  ;;  %v375_v46 = vld [vmem:[%s803_s25 + $0x70] sm:$0xff] }
  0x51   : > { %v381_v12 = vadd.f32 %v365_v63, %v349_v1  ;;  %v382_v13 = vadd.f32 %v366_v0, %v350_v2  ;;  %v337_v17 = vadd.f32 %v848_v39, %v318_v41  ;;  %v338_v18 = vadd.f32 %v848_v39, %v319_v42  ;;  %v373_v41 = vld [vmem:[%s803_s25 + $0x60] sm:$0xff] }
  0x52   : > { %393 = vst [vmem:[%s878_s13] sm:$0xff] %v377_v5  ;;  %v339_v19 = vadd.f32 %v848_v39, %v320_v43  ;;  %v340_v20 = vadd.f32 %v848_v39, %v321_v44  ;;  %v341_v23 = vadd.f32 %v848_v39, %v322_v3  ;;  %v342_v24 = vadd.f32 %v848_v39, %v323_v4  ;;  %v374_v44 = vld [vmem:[%s803_s25 + $0x68] sm:$0xff] }
  0x53   : > { %394 = vst [vmem:[%s878_s13 + $0x8] sm:$0xff] %v378_v6  ;;  %v324_v25 = vmul.f32 %v831_v22, %v305_v9  ;;  %v325_v26 = vmul.f32 %v831_v22, %v306_v10  ;;  %v383_v27 = vadd.f32 %v367_v14, %v351_v8  ;;  %v353_v28 = vmax.f32 %v337_v17, 0.0 }
  0x54   : > { %395 = vst [vmem:[%s878_s13 + $0x10] sm:$0xff] %v379_v7  ;;  %v354_v29 = vmax.f32 %v338_v18, 0.0  ;;  %v355_v31 = vmax.f32 %v339_v19, 0.0  ;;  %v384_v32 = vadd.f32 %v368_v16, %v352_v15  ;;  %v356_v34 = vmax.f32 %v340_v20, 0.0 }
  0x55   : > { %396 = vst [vmem:[%s878_s13 + $0x18] sm:$0xff] %v380_v11  ;;  %v343_v35 = vadd.f32 %v848_v39, %v324_v25  ;;  %v344_v22 = vadd.f32 %v848_v39, %v325_v26  ;;  %v385_v36 = vadd.f32 %v369_v21, %v353_v28  ;;  %v357_v38 = vmax.f32 %v341_v23, 0.0 }
  0x56   : > { %397 = vst [vmem:[%s878_s13 + $0x20] sm:$0xff] %v381_v12  ;;  %v386_v40 = vadd.f32 %v370_v30, %v354_v29  ;;  %v358_v42 = vmax.f32 %v342_v24, 0.0  ;;  %v387_v43 = vadd.f32 %v371_v33, %v355_v31  ;;  %v388_v45 = vadd.f32 %v372_v37, %v356_v34 }
  0x57   : > { %398 = vst [vmem:[%s878_s13 + $0x28] sm:$0xff] %v382_v13  ;;  %v359_v39 = vmax.f32 %v343_v35, 0.0  ;;  %v360_v47 = vmax.f32 %v344_v22, 0.0  ;;  %v389_v48 = vadd.f32 %v373_v41, %v357_v38 }
  0x58   : > { %399 = vst [vmem:[%s878_s13 + $0x30] sm:$0xff] %v383_v27  ;;  %v390_v50 = vadd.f32 %v374_v44, %v358_v42 }
  0x59   : > { %400 = vst [vmem:[%s878_s13 + $0x38] sm:$0xff] %v384_v32  ;;  %v391_v51 = vadd.f32 %v375_v46, %v359_v39  ;;  %v392_v52 = vadd.f32 %v376_v49, %v360_v47 }
  0x5a   : > { %401 = vst [vmem:[%s878_s13 + $0x40] sm:$0xff] %v385_v36 }
  0x5b   : > { %402 = vst [vmem:[%s878_s13 + $0x48] sm:$0xff] %v386_v40 }
  0x5c   : > { %403 = vst [vmem:[%s878_s13 + $0x50] sm:$0xff] %v387_v43 }
  0x5d   : > { %404 = vst [vmem:[%s878_s13 + $0x58] sm:$0xff] %v388_v45 }
  0x5e   : > { %405 = vst [vmem:[%s878_s13 + $0x60] sm:$0xff] %v389_v48 }
  0x5f   : > { %406 = vst [vmem:[%s878_s13 + $0x68] sm:$0xff] %v390_v50 }
  0x60   : > { %407 = vst [vmem:[%s878_s13 + $0x70] sm:$0xff] %v391_v51 }
  0x61   : > { %408 = vst [vmem:[%s878_s13 + $0x78] sm:$0xff] %v392_v52 }
  0x62   : > { %637 = shalt.err (!%p634_p5)
}
  0x63   : > { %s680_s12 = smov 128   ;;  %s681_s23 = smov 8  }
  0x64   : > { %530 = dma.vmem_to_hbm [thread:$0]  (%p761_p10), %s423_s17, 2048, %s425_s26, %s410_s29, %s680_s12, %s680_s12, %s681_s23  }
  0x65 PF: > { %p541_p7 = scmp.ge.s32.totalorder %s676_s21, 2  ;;  %s439_s13 = sand.u32 1, %s664_s18  }
  0x66   : > { %s440_s14 = scalar_lea.sflag [#allocation4], %s439_s13 }
  0x67   : > { %p537_p8 = pnand %p541_p7, %p765_p11 }
  0x69   : > { %p538_p9 = pneg %p537_p8 }
  0x6b   : > { %659 = dma.done.wait (%p538_p9), %s440_s14, 2048  }
  0x6c   : > { %661 = vsyncadd (%p538_p9), %s440_s14, 4294965248  ;;  %p18_p1 = scmp.ge.s32.totalorder %s737_s24, 6   ;;  %s959_s18 = smov %s668_s19 }
  0x6d   : > { %s960_s19 = smov %s672_s20  ;;  %s961_s20 = smov %s749_s27 }
  0x6e   : > { %s962_s21 = smov %s737_s24  ;;  %20 = sbr.rel (!%p18_p1) target bundleno = 5 (0x5), region = 88 }
  0x73   :  { %446 = vsyncpa [#allocation3], 1 }
  0x74   :  { %448 = vsyncpa [#allocation3 + $0x1], 1 }
  0x75   :  { %449 = vsyncpa [#allocation4], 1 }
  0x76   :  { %451 = vsyncpa [#allocation4 + $0x1], 1 }

</bundles_post_ra>
